<compile_context>
chip_gen: v5e
topology: v5e:2x2
jax: 0.10.0
libtpu: 0.0.40
codegen_flags: <defaults>
</compile_context>

<pallas_src>
import jax
import jax.numpy as jnp
from jax.experimental import pallas as pl
from jax.experimental.pallas import tpu as pltpu

_LANES = 128  # TPU lane width


def _round_up(x, m):
    return ((x + m - 1) // m) * m


# ----------------------------- Pallas kernel ------------------------------- #

def _make_fused_kernel(col_offsets, col_vocab_pads, tb, hidden_pad):
    """Fused (one-hot gather-fold + 2-layer MLP) kernel body.

    col_offsets[c]   : row offset of window-column c's folded matrix in m_all
    col_vocab_pads[c]: padded vocab size of window-column c
    """
    n_cols = len(col_offsets)

    def kernel(feat_ref, m_ref, b1_ref, w2_ref, b2_ref, o_ref):
        feat = feat_ref[...]                         # (tb, n_cols) int32, one load

        # ---- layer 1 via folded one-hot matmuls (all MXU work) -------------
        h = jnp.zeros((tb, hidden_pad), jnp.float32)
        for c in range(n_cols):                      # static: one iter per window col
            vp = col_vocab_pads[c]
            k0 = col_offsets[c]                      # multiple of 128 (sublane aligned)
            # Clip keeps invalid ids inside this window's (zero-padded) rows
            # of m_all instead of bleeding into the next window's range.
            ids = jnp.clip(feat[:, c:c + 1], 0, vp - 1)                  # (tb, 1)
            iota = jax.lax.broadcasted_iota(jnp.int32, (tb, vp), 1)      # (tb, vp)
            onehot = (iota == ids).astype(jnp.float32)                   # (tb, vp)
            h = h + jnp.dot(onehot, m_ref[k0:k0 + vp, :],
                            preferred_element_type=jnp.float32)

        # ---- bias + ReLU + layer 2 (lane-dense, unmasked) -------------------
        h = jnp.maximum(h + b1_ref[...], 0.0)
        out = jnp.dot(h, w2_ref[...], preferred_element_type=jnp.float32)
        o_ref[...] = (out + b2_ref[...]).astype(o_ref.dtype)

    return kernel


def fixed_window_forward(features, m_all, b1_pad, w2_pad, b2_pad, *,
                         col_offsets, col_vocab_pads, batch_tile=128):
    """One fused Pallas call. Returns a lane-dense (B_pad, 128) output slab."""
    b, n_cols = features.shape
    k_total, hidden_pad = m_all.shape
    out_pad = w2_pad.shape[1]
    tb = batch_tile
    nb = pl.cdiv(b, tb)
    b_pad = nb * tb
    if b_pad != b:
        # Pad rows with id 0; padded rows are sliced off by the caller.
        features = jnp.pad(features, ((0, b_pad - b), (0, 0)))

    kernel = _make_fused_kernel(tuple(col_offsets), tuple(col_vocab_pads),
                                tb, hidden_pad)

    resident = lambda i: (0, 0)   # folded weights stay VMEM-resident per core

    grid_spec = pl.GridSpec(
        grid=(nb,),                                        # batch tiles
        in_specs=[
            pl.BlockSpec((tb, n_cols), lambda i: (i, 0)),  # features (VMEM, tiled)
            pl.BlockSpec((k_total, hidden_pad), resident), # folded emb @ W1
            pl.BlockSpec((1, hidden_pad), resident),       # b1 (padded lanes zero)
            pl.BlockSpec((hidden_pad, out_pad), resident), # W2 (padded rows zero)
            pl.BlockSpec((1, out_pad), resident),          # b2 (padded lanes zero)
        ],
        out_specs=pl.BlockSpec((tb, out_pad), lambda i: (i, 0)),
    )

    return pl.pallas_call(
        kernel,
        out_shape=jax.ShapeDtypeStruct((b_pad, out_pad), jnp.float32),
        grid_spec=grid_spec,
        compiler_params=pltpu.CompilerParams(
            dimension_semantics=("parallel",),             # shard tiles across TCs
            vmem_limit_bytes=48 * 1024 * 1024),            # headroom < v7x 64 MiB
    )(features, m_all, b1_pad, w2_pad, b2_pad)


# --------------------------- Model (params + call) ------------------------- #

class FixedWindowModelPallas:
    """JAX/Pallas port of FixedWindowModel (pretrained=False path)."""

    def __init__(self, embedding_specs, hidden_dim, output_dim, key,
                 batch_tile=128):
        self.embedding_specs = embedding_specs
        self.index_list = [i for i, _, _ in embedding_specs]
        self.emb_dims = [emb for _, _, emb in embedding_specs]
        self.emb_len_list = [i * emb for i, _, emb in embedding_specs]
        self.concat_dim = sum(self.emb_len_list)
        self.hidden_dim = hidden_dim
        self.output_dim = output_dim
        self.batch_tile = batch_tile
        self.hidden_pad = _round_up(hidden_dim, _LANES)
        self.out_pad = _round_up(output_dim, _LANES)

        keys = jax.random.split(key, len(embedding_specs) + 4)

        # Embedding tables: normal(std=0.01), row 0 zeroed (padding_idx=0
        # convention).  TODO(synk): padding_idx only masks gradients in
        # PyTorch; gradient masking is not modeled here (forward only).
        self.embeddings = []
        for spec_idx, (_, num_words, embedding_dim) in enumerate(embedding_specs):
            w = 0.01 * jax.random.normal(
                keys[spec_idx], (num_words, embedding_dim), dtype=jnp.float32)
            w = w.at[0].set(0.0)
            self.embeddings.append(w)

        # Linear layers (PyTorch-style uniform init, stored as [in, out]).
        k1w, k1b, k2w, k2b = keys[-4:]
        bound1 = 1.0 / (self.concat_dim ** 0.5)
        bound2 = 1.0 / (hidden_dim ** 0.5)
        self.w1 = jax.random.uniform(
            k1w, (self.concat_dim, hidden_dim), minval=-bound1, maxval=bound1,
            dtype=jnp.float32)
        self.b1 = jax.random.uniform(
            k1b, (1, hidden_dim), minval=-bound1, maxval=bound1, dtype=jnp.float32)
        self.w2 = jax.random.uniform(
            k2w, (hidden_dim, output_dim), minval=-bound2, maxval=bound2,
            dtype=jnp.float32)
        self.b2 = jax.random.uniform(
            k2b, (1, output_dim), minval=-bound2, maxval=bound2, dtype=jnp.float32)

        # ---- fold embedding gather into linear1 (host-side precompute) ------
        # For each window column: M_sw = E_s @ W1[rows of that window, :].
        # Vocab rows padded to 128 (zero rows), hidden padded to 128 lanes.
        vocab_pads = [_round_up(v, _LANES) for _, v, _ in embedding_specs]
        k_total = sum(n * vp for (n, _, _), vp in zip(embedding_specs, vocab_pads))
        m_all = jnp.zeros((k_total, self.hidden_pad), jnp.float32)
        col_offsets, col_vocab_pads = [], []
        k_off, a_off = 0, 0
        for s, (n_s, v_s, d_s) in enumerate(embedding_specs):
            vp = vocab_pads[s]
            tbl = self.embeddings[s]
            for _ in range(n_s):
                m_sw = tbl @ self.w1[a_off:a_off + d_s, :]      # (v_s, hidden)
                m_all = m_all.at[k_off:k_off + v_s, :hidden_dim].set(m_sw)
                col_offsets.append(k_off)
                col_vocab_pads.append(vp)
                k_off += vp
                a_off += d_s
        self.m_all = m_all
        self.col_offsets = tuple(col_offsets)
        self.col_vocab_pads = tuple(col_vocab_pads)

        # Lane-dense padded copies; padded lanes/rows are zero so ReLU of the
        # padded b1 lanes contributes nothing to the output.
        self.b1_pad = (jnp.zeros((1, self.hidden_pad), jnp.float32)
                       .at[:, :hidden_dim].set(self.b1))
        self.w2_pad = (jnp.zeros((self.hidden_pad, self.out_pad), jnp.float32)
                       .at[:hidden_dim, :output_dim].set(self.w2))
        self.b2_pad = (jnp.zeros((1, self.out_pad), jnp.float32)
                       .at[:, :output_dim].set(self.b2))

    def __call__(self, features):
        # features: int [batch, sum(index_list)]
        b = features.shape[0]
        out = fixed_window_forward(
            features.astype(jnp.int32), self.m_all,
            self.b1_pad, self.w2_pad, self.b2_pad,
            col_offsets=self.col_offsets, col_vocab_pads=self.col_vocab_pads,
            batch_tile=self.batch_tile)
        return out[:b, :self.output_dim]


# --------------------------------- Main ------------------------------------ #

if __name__ == "__main__":
    key = jax.random.PRNGKey(0)
    k_model, k_feat = jax.random.split(key)

    # (window_size, vocab_size, embedding_dim)
    embedding_specs = [(3, 100, 16), (3, 20, 8)]
    hidden_dim = 32
    output_dim = 8
    batch_size = 8

    model = FixedWindowModelPallas(embedding_specs, hidden_dim, output_dim,
                                   k_model, batch_tile=128)

    # Build integer feature windows: columns grouped per embedding spec.
    feat_cols = []
    kk = k_feat
    for i, num_words, _ in embedding_specs:
        kk, sub = jax.random.split(kk)
        feat_cols.append(
            jax.random.randint(sub, (batch_size, i), 0, num_words,
                               dtype=jnp.int32))
    features = jnp.concatenate(feat_cols, axis=1)  # [8, 6]

    out = model(features)
    out = jax.block_until_ready(out)

    # Pure-JAX reference of the full forward (gather + concat + MLP).
    pieces, curr = [], 0
    for i, tbl in enumerate(model.embeddings):
        n = model.index_list[i]
        pieces.append(jnp.take(tbl, features[:, curr:curr + n], axis=0)
                      .reshape(batch_size, -1))
        curr += n
    x = jnp.concatenate(pieces, axis=1)
    ref = jnp.maximum(x @ model.w1 + model.b1, 0.0) @ model.w2 + model.b2

    assert out.shape == (batch_size, output_dim)
    assert jnp.allclose(out, ref, atol=1e-5), "mismatch vs reference"

    print("KERNEL_OK")
</pallas_src>

<mosaic_0001>
module attributes {stable_mosaic.version = 11 : i64} {
  func.func @kernel(%arg0: i32, %arg1: memref<128x6xi32, #tpu.memory_space<vmem>>, %arg2: memref<768x128xf32, #tpu.memory_space<vmem>>, %arg3: memref<1x128xf32, #tpu.memory_space<vmem>>, %arg4: memref<128x128xf32, #tpu.memory_space<vmem>>, %arg5: memref<1x128xf32, #tpu.memory_space<vmem>>, %arg6: memref<128x128xf32, #tpu.memory_space<vmem>>) attributes {dimension_semantics = [#tpu.dimension_semantics<parallel>], iteration_bounds = array<i64: 1>, scalar_prefetch = 0 : i64, scratch_operands = 0 : i64, tpu.core_type = #tpu.core_type<tc>, window_params = [{transform_indices = @transform_0, window_bounds = array<i64: 128, 6>}, {pipeline_mode = #tpu.pipeline_mode<synchronous>, transform_indices = @transform_1, window_bounds = array<i64: 768, 128>}, {pipeline_mode = #tpu.pipeline_mode<synchronous>, transform_indices = @transform_2, window_bounds = array<i64: 1, 128>}, {pipeline_mode = #tpu.pipeline_mode<synchronous>, transform_indices = @transform_3, window_bounds = array<i64: 128, 128>}, {pipeline_mode = #tpu.pipeline_mode<synchronous>, transform_indices = @transform_4, window_bounds = array<i64: 1, 128>}, {transform_indices = @transform_5, window_bounds = array<i64: 128, 128>}]} {
    %c0 = arith.constant 0 : index
    %c0_0 = arith.constant 0 : index
    %0 = vector.load %arg1[%c0, %c0_0] : memref<128x6xi32, #tpu.memory_space<vmem>>, vector<128x6xi32>
    %cst = arith.constant 0.000000e+00 : f32
    %1 = vector.broadcast %cst : f32 to vector<128x128xf32>
    %2 = vector.extract_strided_slice %0 {offsets = [0, 0], sizes = [128, 1], strides = [1, 1]} : vector<128x6xi32> to vector<128x1xi32>
    %c0_i32 = arith.constant 0 : i32
    %c127_i32 = arith.constant 127 : i32
    %3 = vector.broadcast %c0_i32 : i32 to vector<128x1xi32>
    %4 = arith.maxsi %3, %2 : vector<128x1xi32>
    %5 = vector.broadcast %c127_i32 : i32 to vector<128x1xi32>
    %6 = arith.minsi %5, %4 : vector<128x1xi32>
    %7 = tpu.iota {dimensions = array<i32: 1>} : vector<128x128xi32>
    %8 = vector.broadcast %6 : vector<128x1xi32> to vector<128x128xi32>
    %9 = arith.cmpi eq, %7, %8 : vector<128x128xi32>
    %10 = arith.extui %9 : vector<128x128xi1> to vector<128x128xi32>
    %11 = arith.sitofp %10 : vector<128x128xi32> to vector<128x128xf32>
    %c0_1 = arith.constant 0 : index
    %c0_2 = arith.constant 0 : index
    %12 = vector.load %arg2[%c0_1, %c0_2] : memref<768x128xf32, #tpu.memory_space<vmem>>, vector<128x128xf32>
    %cst_3 = arith.constant dense<0.000000e+00> : vector<128x128xf32>
    %13 = tpu.matmul %11, %12, %cst_3 {dimension_numbers = #tpu.dot_dimension_numbers<[1], [0], [0], [1], [0, 0, 1, 1], [], []>} : vector<128x128xf32>, vector<128x128xf32>, vector<128x128xf32> -> vector<128x128xf32>
    %14 = arith.addf %1, %13 : vector<128x128xf32>
    %15 = vector.extract_strided_slice %0 {offsets = [0, 1], sizes = [128, 1], strides = [1, 1]} : vector<128x6xi32> to vector<128x1xi32>
    %c0_i32_4 = arith.constant 0 : i32
    %c127_i32_5 = arith.constant 127 : i32
    %16 = vector.broadcast %c0_i32_4 : i32 to vector<128x1xi32>
    %17 = arith.maxsi %16, %15 : vector<128x1xi32>
    %18 = vector.broadcast %c127_i32_5 : i32 to vector<128x1xi32>
    %19 = arith.minsi %18, %17 : vector<128x1xi32>
    %20 = tpu.iota {dimensions = array<i32: 1>} : vector<128x128xi32>
    %21 = vector.broadcast %19 : vector<128x1xi32> to vector<128x128xi32>
    %22 = arith.cmpi eq, %20, %21 : vector<128x128xi32>
    %23 = arith.extui %22 : vector<128x128xi1> to vector<128x128xi32>
    %24 = arith.sitofp %23 : vector<128x128xi32> to vector<128x128xf32>
    %c128 = arith.constant 128 : index
    %c0_6 = arith.constant 0 : index
    %25 = vector.load %arg2[%c128, %c0_6] : memref<768x128xf32, #tpu.memory_space<vmem>>, vector<128x128xf32>
    %cst_7 = arith.constant dense<0.000000e+00> : vector<128x128xf32>
    %26 = tpu.matmul %24, %25, %cst_7 {dimension_numbers = #tpu.dot_dimension_numbers<[1], [0], [0], [1], [0, 0, 1, 1], [], []>} : vector<128x128xf32>, vector<128x128xf32>, vector<128x128xf32> -> vector<128x128xf32>
    %27 = arith.addf %14, %26 : vector<128x128xf32>
    %28 = vector.extract_strided_slice %0 {offsets = [0, 2], sizes = [128, 1], strides = [1, 1]} : vector<128x6xi32> to vector<128x1xi32>
    %c0_i32_8 = arith.constant 0 : i32
    %c127_i32_9 = arith.constant 127 : i32
    %29 = vector.broadcast %c0_i32_8 : i32 to vector<128x1xi32>
    %30 = arith.maxsi %29, %28 : vector<128x1xi32>
    %31 = vector.broadcast %c127_i32_9 : i32 to vector<128x1xi32>
    %32 = arith.minsi %31, %30 : vector<128x1xi32>
    %33 = tpu.iota {dimensions = array<i32: 1>} : vector<128x128xi32>
    %34 = vector.broadcast %32 : vector<128x1xi32> to vector<128x128xi32>
    %35 = arith.cmpi eq, %33, %34 : vector<128x128xi32>
    %36 = arith.extui %35 : vector<128x128xi1> to vector<128x128xi32>
    %37 = arith.sitofp %36 : vector<128x128xi32> to vector<128x128xf32>
    %c256 = arith.constant 256 : index
    %c0_10 = arith.constant 0 : index
    %38 = vector.load %arg2[%c256, %c0_10] : memref<768x128xf32, #tpu.memory_space<vmem>>, vector<128x128xf32>
    %cst_11 = arith.constant dense<0.000000e+00> : vector<128x128xf32>
    %39 = tpu.matmul %37, %38, %cst_11 {dimension_numbers = #tpu.dot_dimension_numbers<[1], [0], [0], [1], [0, 0, 1, 1], [], []>} : vector<128x128xf32>, vector<128x128xf32>, vector<128x128xf32> -> vector<128x128xf32>
    %40 = arith.addf %27, %39 : vector<128x128xf32>
    %41 = vector.extract_strided_slice %0 {offsets = [0, 3], sizes = [128, 1], strides = [1, 1]} : vector<128x6xi32> to vector<128x1xi32>
    %c0_i32_12 = arith.constant 0 : i32
    %c127_i32_13 = arith.constant 127 : i32
    %42 = vector.broadcast %c0_i32_12 : i32 to vector<128x1xi32>
    %43 = arith.maxsi %42, %41 : vector<128x1xi32>
    %44 = vector.broadcast %c127_i32_13 : i32 to vector<128x1xi32>
    %45 = arith.minsi %44, %43 : vector<128x1xi32>
    %46 = tpu.iota {dimensions = array<i32: 1>} : vector<128x128xi32>
    %47 = vector.broadcast %45 : vector<128x1xi32> to vector<128x128xi32>
    %48 = arith.cmpi eq, %46, %47 : vector<128x128xi32>
    %49 = arith.extui %48 : vector<128x128xi1> to vector<128x128xi32>
    %50 = arith.sitofp %49 : vector<128x128xi32> to vector<128x128xf32>
    %c384 = arith.constant 384 : index
    %c0_14 = arith.constant 0 : index
    %51 = vector.load %arg2[%c384, %c0_14] : memref<768x128xf32, #tpu.memory_space<vmem>>, vector<128x128xf32>
    %cst_15 = arith.constant dense<0.000000e+00> : vector<128x128xf32>
    %52 = tpu.matmul %50, %51, %cst_15 {dimension_numbers = #tpu.dot_dimension_numbers<[1], [0], [0], [1], [0, 0, 1, 1], [], []>} : vector<128x128xf32>, vector<128x128xf32>, vector<128x128xf32> -> vector<128x128xf32>
    %53 = arith.addf %40, %52 : vector<128x128xf32>
    %54 = vector.extract_strided_slice %0 {offsets = [0, 4], sizes = [128, 1], strides = [1, 1]} : vector<128x6xi32> to vector<128x1xi32>
    %c0_i32_16 = arith.constant 0 : i32
    %c127_i32_17 = arith.constant 127 : i32
    %55 = vector.broadcast %c0_i32_16 : i32 to vector<128x1xi32>
    %56 = arith.maxsi %55, %54 : vector<128x1xi32>
    %57 = vector.broadcast %c127_i32_17 : i32 to vector<128x1xi32>
    %58 = arith.minsi %57, %56 : vector<128x1xi32>
    %59 = tpu.iota {dimensions = array<i32: 1>} : vector<128x128xi32>
    %60 = vector.broadcast %58 : vector<128x1xi32> to vector<128x128xi32>
    %61 = arith.cmpi eq, %59, %60 : vector<128x128xi32>
    %62 = arith.extui %61 : vector<128x128xi1> to vector<128x128xi32>
    %63 = arith.sitofp %62 : vector<128x128xi32> to vector<128x128xf32>
    %c512 = arith.constant 512 : index
    %c0_18 = arith.constant 0 : index
    %64 = vector.load %arg2[%c512, %c0_18] : memref<768x128xf32, #tpu.memory_space<vmem>>, vector<128x128xf32>
    %cst_19 = arith.constant dense<0.000000e+00> : vector<128x128xf32>
    %65 = tpu.matmul %63, %64, %cst_19 {dimension_numbers = #tpu.dot_dimension_numbers<[1], [0], [0], [1], [0, 0, 1, 1], [], []>} : vector<128x128xf32>, vector<128x128xf32>, vector<128x128xf32> -> vector<128x128xf32>
    %66 = arith.addf %53, %65 : vector<128x128xf32>
    %67 = vector.extract_strided_slice %0 {offsets = [0, 5], sizes = [128, 1], strides = [1, 1]} : vector<128x6xi32> to vector<128x1xi32>
    %c0_i32_20 = arith.constant 0 : i32
    %c127_i32_21 = arith.constant 127 : i32
    %68 = vector.broadcast %c0_i32_20 : i32 to vector<128x1xi32>
    %69 = arith.maxsi %68, %67 : vector<128x1xi32>
    %70 = vector.broadcast %c127_i32_21 : i32 to vector<128x1xi32>
    %71 = arith.minsi %70, %69 : vector<128x1xi32>
    %72 = tpu.iota {dimensions = array<i32: 1>} : vector<128x128xi32>
    %73 = vector.broadcast %71 : vector<128x1xi32> to vector<128x128xi32>
    %74 = arith.cmpi eq, %72, %73 : vector<128x128xi32>
    %75 = arith.extui %74 : vector<128x128xi1> to vector<128x128xi32>
    %76 = arith.sitofp %75 : vector<128x128xi32> to vector<128x128xf32>
    %c640 = arith.constant 640 : index
    %c0_22 = arith.constant 0 : index
    %77 = vector.load %arg2[%c640, %c0_22] : memref<768x128xf32, #tpu.memory_space<vmem>>, vector<128x128xf32>
    %cst_23 = arith.constant dense<0.000000e+00> : vector<128x128xf32>
    %78 = tpu.matmul %76, %77, %cst_23 {dimension_numbers = #tpu.dot_dimension_numbers<[1], [0], [0], [1], [0, 0, 1, 1], [], []>} : vector<128x128xf32>, vector<128x128xf32>, vector<128x128xf32> -> vector<128x128xf32>
    %79 = arith.addf %66, %78 : vector<128x128xf32>
    %c0_24 = arith.constant 0 : index
    %c0_25 = arith.constant 0 : index
    %80 = vector.load %arg3[%c0_24, %c0_25] : memref<1x128xf32, #tpu.memory_space<vmem>>, vector<1x128xf32>
    %81 = vector.broadcast %80 : vector<1x128xf32> to vector<128x128xf32>
    %82 = arith.addf %79, %81 : vector<128x128xf32>
    %cst_26 = arith.constant 0.000000e+00 : f32
    %83 = vector.broadcast %cst_26 : f32 to vector<128x128xf32>
    %84 = arith.maximumf %82, %83 : vector<128x128xf32>
    %c0_27 = arith.constant 0 : index
    %c0_28 = arith.constant 0 : index
    %85 = vector.load %arg4[%c0_27, %c0_28] : memref<128x128xf32, #tpu.memory_space<vmem>>, vector<128x128xf32>
    %cst_29 = arith.constant dense<0.000000e+00> : vector<128x128xf32>
    %86 = tpu.matmul %84, %85, %cst_29 {dimension_numbers = #tpu.dot_dimension_numbers<[1], [0], [0], [1], [0, 0, 1, 1], [], []>} : vector<128x128xf32>, vector<128x128xf32>, vector<128x128xf32> -> vector<128x128xf32>
    %c0_30 = arith.constant 0 : index
    %c0_31 = arith.constant 0 : index
    %87 = vector.load %arg5[%c0_30, %c0_31] : memref<1x128xf32, #tpu.memory_space<vmem>>, vector<1x128xf32>
    %88 = vector.broadcast %87 : vector<1x128xf32> to vector<128x128xf32>
    %89 = arith.addf %86, %88 : vector<128x128xf32>
    %c0_32 = arith.constant 0 : index
    %c0_33 = arith.constant 0 : index
    %90 = vector.load %arg6[%c0_32, %c0_33] : memref<128x128xf32, #tpu.memory_space<vmem>>, vector<128x128xf32>
    tpu.vector_store %arg6[%c0_32, %c0_33], %89 {strides = array<i32>} : memref<128x128xf32, #tpu.memory_space<vmem>>, vector<128x128xf32>,
    return
  }
  func.func @transform_0(%arg0: i32) -> (i32, i32) {
    %c0_i32 = arith.constant 0 : i32
    %c0_i32_0 = arith.constant 0 : i32
    return %arg0, %c0_i32 : i32, i32
  }
  func.func @transform_1(%arg0: i32) -> (i32, i32) {
    %c0_i32 = arith.constant 0 : i32
    %c0_i32_0 = arith.constant 0 : i32
    %c0_i32_1 = arith.constant 0 : i32
    return %c0_i32, %c0_i32_0 : i32, i32
  }
  func.func @transform_2(%arg0: i32) -> (i32, i32) {
    %c0_i32 = arith.constant 0 : i32
    %c0_i32_0 = arith.constant 0 : i32
    %c0_i32_1 = arith.constant 0 : i32
    return %c0_i32, %c0_i32_0 : i32, i32
  }
  func.func @transform_3(%arg0: i32) -> (i32, i32) {
    %c0_i32 = arith.constant 0 : i32
    %c0_i32_0 = arith.constant 0 : i32
    %c0_i32_1 = arith.constant 0 : i32
    return %c0_i32, %c0_i32_0 : i32, i32
  }
  func.func @transform_4(%arg0: i32) -> (i32, i32) {
    %c0_i32 = arith.constant 0 : i32
    %c0_i32_0 = arith.constant 0 : i32
    %c0_i32_1 = arith.constant 0 : i32
    return %c0_i32, %c0_i32_0 : i32, i32
  }
  func.func @transform_5(%arg0: i32) -> (i32, i32) {
    %c0_i32 = arith.constant 0 : i32
    %c0_i32_0 = arith.constant 0 : i32
    return %arg0, %c0_i32 : i32, i32
  }
}

</mosaic_0001>

<bundles_post_ra>
// kernel: tpu_custom_call.1
= control target key start
LH: loop header
LB: loop body
LE: loop exit
PB: predicated region body
PF: predicated region fallthrough
CT: control target
= control target key end

     0   :  { %10 = vsyncpa [#allocation3], 0  ;;  %s2551_s0 = inlined_call_operand.vmem [shape: s32[128,6], index: 0, kind: input, shape index: {}]   ;;  %s2552_s1 = inlined_call_operand.hbm [shape: f32[768,128], index: 1, kind: input, shape index: {}]   ;;  %s2553_s2 = inlined_call_operand.vmem [shape: f32[1,128], index: 2, kind: input, shape index: {}]   ;;  %s2554_s3 = inlined_call_operand.vmem [shape: f32[128,128], index: 3, kind: input, shape index: {}]   ;;  %s2555_s4 = inlined_call_operand.vmem [shape: f32[1,128], index: 4, kind: input, shape index: {}]   ;;  %s2556_s5 = inlined_call_operand.hbm [shape: f32[128,128], index: 5, kind: output, shape index: {}]  }
   0x1   :  { %11 = vsyncpa [#allocation4], 0  ;;  %s18_s20 = sshll.u32 %s2552_s1, 4  ;;  %s1771_s21 = smov [#allocation2]   ;;  %s19_s20 = int_to_ptr.hbm [resolvable:$true] %s18_s20 }
   0x2   :  { %s20_s22 = sshll.u32 %s1771_s21, 4  ;;  %s1772_s23 = smov 128   ;;  %s21_s22 = int_to_ptr.vmem [resolvable:$true] %s20_s22 }
   0x3   :  { %s1773_s24 = smov 8  }
   0x4   :  { %26 = dma.hbm_to_vmem [thread:$0]  %s19_s20, 12288, %s21_s22, [#allocation3], %s1772_s23, %s1772_s23, %s1773_s24  }
   0x5   :  { %1767 = dma.done.wait [#allocation3], 12288  }
   0x6   :  { %1768 = vsyncadd [#allocation3], 4294955008  ;;  %v1774_v0 = vmov 1   ;;  %v1775_v1 = vmov 0   ;;  %v41_v2 = vld [vmem:[%s2551_s0 + $0x20] sm:$0xff]  ;;  %v39_v3 = vld [vmem:[%s2551_s0 + $0x10] sm:$0xff] }
   0x7   :  { %1655 = vset.pattern.permute.xlu0 %v1774_v0  ;;  %1653 = vset.pattern.permute.xlu2 %v1775_v1  ;;  %v37_v4 = vld [vmem:[%s2551_s0] sm:$0xff]  ;;  %vm61_vm0 = vcmp.gt.s32.totalorder %v41_v2, 0  ;;  %vm57_vm1 = vcmp.gt.s32.totalorder %v39_v3, 0  ;;  %v42_v5 = vld [vmem:[%s2551_s0 + $0x28] sm:$0xff]  ;;  %v40_v9 = vld [vmem:[%s2551_s0 + $0x18] sm:$0xff]  ;;  %s1388_s18 = sshll.u32 %s2556_s5, 4  ;;  %s1389_s18 = int_to_ptr.hbm [resolvable:$true] %s1388_s18 }
   0x8   :  { %1652 = vset.pattern.permute.xlu1 %v1775_v1  ;;  %vm53_vm2 = vcmp.gt.s32.totalorder %v37_v4, 0  ;;  %v62_v6 = vsel %vm61_vm0, %v41_v2, 0  ;;  %v58_v7 = vsel %vm57_vm1, %v39_v3, 0  ;;  %vm63_vm3 = vcmp.gt.s32.totalorder %v42_v5, 0  ;;  %v44_v10 = vld [vmem:[%s2551_s0 + $0x38] sm:$0xff]  ;;  %v46_v17 = vld [vmem:[%s2551_s0 + $0x48] sm:$0xff] }
   0x9   :  { %v54_v8 = vsel %vm53_vm2, %v37_v4, 0  ;;  %vm93_vm4 = vcmp.lt.s32.totalorder %v62_v6, 127  ;;  %vm89_vm5 = vcmp.lt.s32.totalorder %v58_v7, 127  ;;  %v64_v14 = vsel %vm63_vm3, %v42_v5, 0  ;;  %v50_v22 = vld [vmem:[%s2551_s0 + $0x68] sm:$0xff]  ;;  %v43_v27 = vld [vmem:[%s2551_s0 + $0x30] sm:$0xff] }
   0xa   :  { %vm85_vm6 = vcmp.lt.s32.totalorder %v54_v8, 127  ;;  %v1839_v11 = vsel %vm93_vm4, %v62_v6, 127  ;;  %v1841_v12 = vsel %vm89_vm5, %v58_v7, 127  ;;  %vm59_vm7 = vcmp.gt.s32.totalorder %v40_v9, 0  ;;  %v38_v23 = vld [vmem:[%s2551_s0 + $0x8] sm:$0xff]  ;;  %v45_v31 = vld [vmem:[%s2551_s0 + $0x40] sm:$0xff] }
   0xb   :  { %v1843_v13 = vsel %vm85_vm6, %v54_v8, 127  ;;  %132 = vperm.xlu2 %1653, %v1839_v11   ;;  %126 = vperm.xlu1 %1652, %v1841_v12   ;;  %vm67_vm8 = vcmp.gt.s32.totalorder %v44_v10, 0  ;;  %v60_v15 = vsel %vm59_vm7, %v40_v9, 0  ;;  %vm95_vm9 = vcmp.lt.s32.totalorder %v64_v14, 127  ;;  %v47_v34 = vld [vmem:[%s2551_s0 + $0x50] sm:$0xff]  ;;  %v48_v37 = vld [vmem:[%s2551_s0 + $0x58] sm:$0xff] }
   0xc   :  { %232 = vperm.xlu0 %1655, %v1843_v13   ;;  %v68_v16 = vsel %vm67_vm8, %v44_v10, 0  ;;  %vm91_vm10 = vcmp.lt.s32.totalorder %v60_v15, 127  ;;  %v1851_v18 = vsel %vm95_vm9, %v64_v14, 127  ;;  %vm71_vm12 = vcmp.gt.s32.totalorder %v46_v17, 0  ;;  %v1903_v38 = vld [vmem:[#allocation2 + $0x78] sm:$0xff]  ;;  %v1912_v42 = vld [vmem:[#allocation2 + $0x70] sm:$0xff] }
   0xd   :  { %vm99_vm11 = vcmp.lt.s32.totalorder %v68_v16, 127  ;;  %v1853_v19 = vsel %vm91_vm10, %v60_v15, 127  ;;  %v72_v21 = vsel %vm71_vm12, %v46_v17, 0  ;;  %vm79_vm14 = vcmp.gt.s32.totalorder %v50_v22, 0  ;;  %1609 = vmatpush.msra.mxu1 %v1903_v38  ;;  %v342_v41 = vld [vmem:[#allocation2 + $0xf8] sm:$0xff]  ;;  %v49_v43 = vld [vmem:[%s2551_s0 + $0x60] sm:$0xff] }
   0xe   :  { %v1855_v20 = vsel %vm99_vm11, %v68_v16, 127  ;;  %vm103_vm13 = vcmp.lt.s32.totalorder %v72_v21, 127  ;;  %vm55_vm15 = vcmp.gt.s32.totalorder %v38_v23, 0  ;;  %v80_v25 = vsel %vm79_vm14, %v50_v22, 0  ;;  %1593 = vmatpush.msra.mxu3 %v342_v41  ;;  %v341_v44 = vld [vmem:[#allocation2 + $0xf0] sm:$0xff]  ;;  %v1918_v45 = vld [vmem:[#allocation2 + $0x68] sm:$0xff]  ;;  %343 = vmatpush.msra.mxu0 %v342_v41 }
   0xf   :  { %v1866_v24 = vsel %vm103_vm13, %v72_v21, 127  ;;  %v56_v26 = vsel %vm55_vm15, %v38_v23, 0  ;;  %vm111_vm0 = vcmp.lt.s32.totalorder %v80_v25, 127  ;;  %vm65_vm2 = vcmp.gt.s32.totalorder %v43_v27, 0  ;;  %1610 = vmatpush.msra.mxu1 %v1912_v42  ;;  %v340_v46 = vld [vmem:[#allocation2 + $0xe8] sm:$0xff]  ;;  %v1921_v47 = vld [vmem:[#allocation2 + $0x60] sm:$0xff] }
  0x10   :  { %vm87_vm1 = vcmp.lt.s32.totalorder %v56_v26, 127  ;;  %v1875_v28 = vsel %vm111_vm0, %v80_v25, 127  ;;  %v66_v30 = vsel %vm65_vm2, %v43_v27, 0  ;;  %vm69_vm4 = vcmp.gt.s32.totalorder %v45_v31, 0  ;;  %1594 = vmatpush.msra.mxu3 %v341_v44  ;;  %344 = vmatpush.msra.mxu0 %v341_v44  ;;  %v339_v49 = vld [vmem:[#allocation2 + $0xe0] sm:$0xff]  ;;  %v1928_v50 = vld [vmem:[#allocation2 + $0x58] sm:$0xff] }
  0x11   :  { %v1877_v29 = vsel %vm87_vm1, %v56_v26, 127  ;;  %vm97_vm3 = vcmp.lt.s32.totalorder %v66_v30, 127  ;;  %v70_v33 = vsel %vm69_vm4, %v45_v31, 0  ;;  %vm73_vm6 = vcmp.gt.s32.totalorder %v47_v34, 0  ;;  %1611 = vmatpush.msra.mxu1 %v1918_v45  ;;  %v338_v52 = vld [vmem:[#allocation2 + $0xd8] sm:$0xff]  ;;  %v1933_v53 = vld [vmem:[#allocation2 + $0x50] sm:$0xff] }
  0x12   :  { %v1886_v32 = vsel %vm97_vm3, %v66_v30, 127  ;;  %vm101_vm5 = vcmp.lt.s32.totalorder %v70_v33, 127  ;;  %v74_v36 = vsel %vm73_vm6, %v47_v34, 0  ;;  %vm75_vm8 = vcmp.gt.s32.totalorder %v48_v37, 0  ;;  %1595 = vmatpush.msra.mxu3 %v340_v46  ;;  %345 = vmatpush.msra.mxu0 %v340_v46  ;;  %v337_v54 = vld [vmem:[#allocation2 + $0xd0] sm:$0xff]  ;;  %v1936_v55 = vld [vmem:[#allocation2 + $0x48] sm:$0xff] }
  0x13   :  { %135 = vperm.xlu2 %1653, %v1851_v18   ;;  %129 = vperm.xlu1 %1652, %v1853_v19   ;;  %v1895_v35 = vsel %vm101_vm5, %v70_v33, 127  ;;  %vm105_vm7 = vcmp.lt.s32.totalorder %v74_v36, 127  ;;  %v76_v40 = vsel %vm75_vm8, %v48_v37, 0  ;;  %vm77_vm10 = vcmp.gt.s32.totalorder %v49_v43, 0  ;;  %v336_v56 = vld [vmem:[#allocation2 + $0xc8] sm:$0xff]  ;;  %v1939_v57 = vld [vmem:[#allocation2 + $0x40] sm:$0xff] }
  0x14   :  { %253 = vperm.xlu0 %1655, %v1855_v20   ;;  %v1906_v39 = vsel %vm105_vm7, %v74_v36, 127  ;;  %vm107_vm9 = vcmp.lt.s32.totalorder %v76_v40, 127  ;;  %1612 = vmatpush.msra.mxu1 %v1921_v47  ;;  %v78_v51 = vsel %vm77_vm10, %v49_v43, 0  ;;  %v335_v59 = vld [vmem:[#allocation2 + $0xc0] sm:$0xff]  ;;  %v1945_v60 = vld [vmem:[#allocation2 + $0x38] sm:$0xff]  ;;  %v1950_v62 = vld [vmem:[#allocation2 + $0x30] sm:$0xff]  ;;  %v117_v25 = vlaneseq }
  0x15   :  { %v1924_v48 = vsel %vm107_vm9, %v76_v40, 127  ;;  %1596 = vmatpush.msra.mxu3 %v339_v49  ;;  %346 = vmatpush.msra.mxu0 %v339_v49  ;;  %vm109_vm11 = vcmp.lt.s32.totalorder %v78_v51, 127  ;;  %v334_v61 = vld [vmem:[#allocation2 + $0xb8] sm:$0xff]  ;;  %v333_v63 = vld [vmem:[#allocation2 + $0xb0] sm:$0xff]  ;;  %v1953_v2 = vld [vmem:[#allocation2 + $0x28] sm:$0xff]  ;;  %v1776_v6 = vmov 2  }
  0x16   :  { %1613 = vmatpush.msra.mxu1 %v1928_v50  ;;  %v1941_v58 = vsel %vm109_vm11, %v78_v51, 127  ;;  %v51_v3 = vld [vmem:[%s2551_s0 + $0x70] sm:$0xff]  ;;  %v332_v4 = vld [vmem:[#allocation2 + $0xa8] sm:$0xff]  ;;  %v1960_v5 = vld [vmem:[#allocation2 + $0x20] sm:$0xff]  ;;  %v1777_v30 = vmov 3   ;;  %v1990_v31 = vand.u32 127, %v117_v25 }
  0x17   :  { %1597 = vmatpush.msra.mxu3 %v338_v52  ;;  %347 = vmatpush.msra.mxu0 %v338_v52  ;;  %vm81_vm12 = vcmp.gt.s32.totalorder %v51_v3, 0  ;;  %v331_v7 = vld [vmem:[#allocation2 + $0xa0] sm:$0xff]  ;;  %v1965_v8 = vld [vmem:[#allocation2 + $0x18] sm:$0xff]  ;;  %v1970_v14 = vld [vmem:[#allocation2 + $0x10] sm:$0xff]  ;;  %v1779_v41 = vmov 5  }
  0x18   :  { %1614 = vmatpush.msra.mxu1 %v1933_v53  ;;  %v330_v9 = vld [vmem:[#allocation2 + $0x98] sm:$0xff]  ;;  %v82_v10 = vsel %vm81_vm12, %v51_v3, 0  ;;  %v329_v15 = vld [vmem:[#allocation2 + $0x90] sm:$0xff]  ;;  %v1976_v17 = vld [vmem:[#allocation2 + $0x8] sm:$0xff] }
  0x19   :  { %1598 = vmatpush.msra.mxu3 %v337_v54  ;;  %348 = vmatpush.msra.mxu0 %v337_v54  ;;  %v52_v16 = vld [vmem:[%s2551_s0 + $0x78] sm:$0xff]  ;;  %vm113_vm13 = vcmp.lt.s32.totalorder %v82_v10, 127  ;;  %v328_v21 = vld [vmem:[#allocation2 + $0x88] sm:$0xff]  ;;  %v1979_v22 = vld [vmem:[#allocation2] sm:$0xff] }
  0x1a   :  { %1615 = vmatpush.msra.mxu1 %v1936_v55  ;;  %vm83_vm14 = vcmp.gt.s32.totalorder %v52_v16, 0  ;;  %v1983_v23 = vsel %vm113_vm13, %v82_v10, 127  ;;  %v327_v26 = vld [vmem:[#allocation2 + $0x80] sm:$0xff]  ;;  %v584_v46 = vld [vmem:[#allocation2 + $0x178] sm:$0xff] }
  0x1b   :  { %1654 = vset.pattern.permute.xlu2 %v1774_v0  ;;  %141 = vperm.xlu1 %1652, %v1855_v20   ;;  %v84_v27 = vsel %vm83_vm14, %v52_v16, 0  ;;  %v580_v52 = vld [vmem:[#allocation2 + $0x158] sm:$0xff]  ;;  %v573_v3 = vld [vmem:[#allocation2 + $0x120] sm:$0xff] }
  0x1c   :  { %259 = vperm.xlu0 %1655, %v1866_v24   ;;  %244 = vperm.xlu2 %1654, %v1839_v11   ;;  %vm115_vm15 = vcmp.lt.s32.totalorder %v84_v27, 127  ;;  %v774_v25 = vld [vmem:[#allocation2 + $0x1e0] sm:$0xff] }
  0x1d   :  { %1599 = vmatpush.msra.mxu3 %v336_v56  ;;  %1616 = vmatpush.msra.mxu1 %v1939_v57  ;;  %v1994_v34 = vsel %vm115_vm15, %v84_v27, 127 }
  0x1e   :  { %349 = vmatpush.msra.mxu0 %v336_v56  ;;  %1625 = vmatpush.msra.mxu2 %v584_v46  ;;  %v578_v56 = vld [vmem:[#allocation2 + $0x148] sm:$0xff] }
  0x1f   :  { %1600 = vmatpush.msra.mxu3 %v335_v59  ;;  %1617 = vmatpush.msra.mxu1 %v1945_v60 }
  0x20   :  { %350 = vmatpush.msra.mxu0 %v335_v59  ;;  %v576_v59 = vld [vmem:[#allocation2 + $0x138] sm:$0xff] }
  0x21   :  { %1601 = vmatpush.msra.mxu3 %v334_v61  ;;  %1618 = vmatpush.msra.mxu1 %v1950_v62 }
  0x22   :  { %351 = vmatpush.msra.mxu0 %v334_v61  ;;  %v574_v61 = vld [vmem:[#allocation2 + $0x128] sm:$0xff] }
  0x23   :  { %1656 = vset.pattern.permute.xlu1 %v1774_v0  ;;  %1602 = vmatpush.msra.mxu3 %v333_v63 }
  0x24   :  { %271 = vperm.xlu0 %1655, %v1875_v28   ;;  %247 = vperm.xlu1 %1656, %v1851_v18  }
  0x25   :  { %235 = vperm.xlu2 %1654, %v1877_v29   ;;  %1619 = vmatpush.msra.mxu1 %v1953_v2 }
  0x26   :  { %1603 = vmatpush.msra.mxu3 %v332_v4  ;;  %352 = vmatpush.msra.mxu0 %v333_v63 }
  0x27   :  { %1620 = vmatpush.msra.mxu1 %v1960_v5 }
  0x28   :  { %1604 = vmatpush.msra.mxu3 %v331_v7  ;;  %353 = vmatpush.msra.mxu0 %v332_v4  ;;  %v572_v4 = vld [vmem:[#allocation2 + $0x118] sm:$0xff] }
  0x29   :  { %1621 = vmatpush.msra.mxu1 %v1965_v8 }
  0x2a   :  { %1605 = vmatpush.msra.mxu3 %v330_v9  ;;  %354 = vmatpush.msra.mxu0 %v331_v7  ;;  %v570_v7 = vld [vmem:[#allocation2 + $0x108] sm:$0xff] }
  0x2b   :  { %1622 = vmatpush.msra.mxu1 %v1970_v14 }
  0x2c   :  { %1660 = vset.pattern.permute.xlu0 %v1775_v1  ;;  %250 = vperm.xlu1 %1656, %v1886_v32  }
  0x2d   :  { %238 = vperm.xlu2 %1654, %v1841_v12   ;;  %120 = vperm.xlu0 %1660, %v1843_v13  }
  0x2e   :  { %1606 = vmatpush.msra.mxu3 %v329_v15  ;;  %1623 = vmatpush.msra.mxu1 %v1976_v17 }
  0x2f   :  { %355 = vmatpush.msra.mxu0 %v330_v9 }
  0x30   :  { %1607 = vmatpush.msra.mxu3 %v328_v21  ;;  %1624 = vmatpush.msra.mxu1 %v1979_v22 }
  0x31   :  { %356 = vmatpush.msra.mxu0 %v329_v15 }
  0x32   :  { %1608 = vmatpush.msra.mxu3 %v327_v26 }
  0x33   :  { %357 = vmatpush.msra.mxu0 %v328_v21  ;;  %v775_v21 = vld [vmem:[#allocation2 + $0x1e8] sm:$0xff] }
  0x34   :  { %241 = vperm.xlu1 %1656, %v1853_v19  }
  0x35   :  { %256 = vperm.xlu2 %1654, %v1895_v35   ;;  %123 = vperm.xlu0 %1660, %v1877_v29  }
  0x36   :  { %358 = vmatpush.msra.mxu0 %v327_v26 }
  0x38   :  { %408 = vmatpush.msrb.mxu0 %v1903_v38 }
  0x3a   :  { %409 = vmatpush.msrb.mxu0 %v1912_v42  ;;  %v1780_v42 = vmov 4  }
  0x3c   :  { %1657 = vset.pattern.permute.xlu1 %v1775_v1  ;;  %410 = vmatpush.msrb.mxu0 %v1918_v45 }
  0x3d   :  { %262 = vperm.xlu2 %1654, %v1906_v39   ;;  %138 = vperm.xlu0 %1660, %v1886_v32  }
  0x3e   :  { %144 = vperm.xlu1 %1657, %v1895_v35   ;;  %411 = vmatpush.msrb.mxu0 %v1921_v47  ;;  %v583_v47 = vld [vmem:[#allocation2 + $0x170] sm:$0xff] }
  0x3f   :  { %1626 = vmatpush.msra.mxu2 %v583_v47 }
  0x40   :  { %412 = vmatpush.msrb.mxu0 %v1928_v50  ;;  %v582_v50 = vld [vmem:[#allocation2 + $0x168] sm:$0xff] }
  0x41   :  { %1627 = vmatpush.msra.mxu2 %v582_v50 }
  0x42   :  { %413 = vmatpush.msrb.mxu0 %v1933_v53  ;;  %v579_v53 = vld [vmem:[#allocation2 + $0x150] sm:$0xff] }
  0x44   :  { %414 = vmatpush.msrb.mxu0 %v1936_v55 }
  0x45   :  { %1659 = vset.pattern.permute.xlu2 %v1775_v1  ;;  %147 = vperm.xlu0 %1660, %v1866_v24  }
  0x46   :  { %1658 = vset.pattern.permute.xlu1 %v1774_v0  ;;  %150 = vperm.xlu2 %1659, %v1906_v39  }
  0x47   :  { %265 = vperm.xlu1 %1658, %v1924_v48   ;;  %415 = vmatpush.msrb.mxu0 %v1939_v57 }
  0x49   :  { %416 = vmatpush.msrb.mxu0 %v1945_v60  ;;  %v575_v60 = vld [vmem:[#allocation2 + $0x130] sm:$0xff] }
  0x4b   :  { %417 = vmatpush.msrb.mxu0 %v1950_v62 }
  0x4d   :  { %159 = vperm.xlu0 %1660, %v1875_v28   ;;  %418 = vmatpush.msrb.mxu0 %v1953_v2 }
  0x4e   :  { %153 = vperm.xlu2 %1659, %v1924_v48  }
  0x4f   :  { %268 = vperm.xlu1 %1658, %v1941_v58   ;;  %419 = vmatpush.msrb.mxu0 %v1960_v5  ;;  %v571_v5 = vld [vmem:[#allocation2 + $0x110] sm:$0xff] }
  0x51   :  { %420 = vmatpush.msrb.mxu0 %v1965_v8 }
  0x53   :  { %421 = vmatpush.msrb.mxu0 %v1970_v14  ;;  %v569_v14 = vld [vmem:[#allocation2 + $0x100] sm:$0xff] }
  0x55   :  { %1668 = vset.pattern.permute.xlu0 %v1776_v6  ;;  %422 = vmatpush.msrb.mxu0 %v1976_v17  ;;  %v777_v17 = vld [vmem:[#allocation2 + $0x1f8] sm:$0xff] }
  0x56   :  { %156 = vperm.xlu2 %1659, %v1941_v58   ;;  %486 = vperm.xlu0 %1668, %v1839_v11  }
  0x57   :  { %1661 = vset.pattern.permute.xlu1 %v1776_v6  ;;  %423 = vmatpush.msrb.mxu0 %v1979_v22  ;;  %v970_v22 = vld [vmem:[#allocation2 + $0x278] sm:$0xff] }
  0x58   :  { %474 = vperm.xlu1 %1661, %v1843_v13   ;;  %778 = vmatpush.msrb.mxu3 %v777_v17  ;;  %v958_v17 = vld [vmem:[#allocation2 + $0x218] sm:$0xff] }
  0x5e   :  { %1663 = vset.pattern.permute.xlu2 %v1776_v6  ;;  %1669 = vset.pattern.permute.xlu0 %v1777_v30 }
  0x5f   :  { %477 = vperm.xlu2 %1663, %v1877_v29   ;;  %667 = vperm.xlu0 %1669, %v1843_v13  }
  0x60   :  { %1662 = vset.pattern.permute.xlu1 %v1774_v0  ;;  %v1778_v0 = vmov 1.0  }
  0x61   :  { %274 = vperm.xlu1 %1662, %v1983_v23  }
  0x65   :  { %v133_v33 = vpop.permute.xlu2 %132 }
  0x66   :  { %vm171_vm0 = vcmp.eq.s32.totalorder %v1990_v31, %v133_v33 }
  0x67   :  { %480 = vperm.xlu2 %1663, %v1841_v12   ;;  %1453 = vmatmul.msk.f32.vlgmr.msra.gmra.mxu1 %vm171_vm0, %v1778_v0 }
  0x68   :  { %673 = vperm.xlu0 %1669, %v1841_v12  }
  0x69   :  { %277 = vperm.xlu1 %1662, %v1994_v34  }
  0x6d   :  { %v136_v36 = vpop.permute.xlu2 %135 }
  0x6e   :  { %vm172_vm1 = vcmp.eq.s32.totalorder %v1990_v31, %v136_v36  ;;  %v773_v36 = vld [vmem:[#allocation2 + $0x1d8] sm:$0xff] }
  0x6f   :  { %483 = vperm.xlu2 %1663, %v1853_v19   ;;  %1454 = vmatmul.msk.f32.gmra.mxu1 %vm172_vm1, %v1778_v0 }
  0x70   :  { %676 = vperm.xlu0 %1669, %v1853_v19  }
  0x71   :  { %1664 = vset.pattern.permute.xlu1 %v1775_v1 }
  0x72   :  { %162 = vperm.xlu1 %1664, %v1983_v23  }
  0x76   :  { %v245_v37 = vpop.permute.xlu2 %244 }
  0x77   :  { %vm283_vm2 = vcmp.eq.s32.totalorder %v1990_v31, %v245_v37  ;;  %1665 = vset.pattern.permute.xlu2 %v1777_v30  ;;  %v969_v37 = vld [vmem:[#allocation2 + $0x270] sm:$0xff] }
  0x78   :  { %670 = vperm.xlu2 %1665, %v1877_v29   ;;  %1437 = vmatmul.msk.f32.vlgmr.msra.gmra.mxu3 %vm283_vm2, %v1778_v0 }
  0x79   :  { %682 = vperm.xlu0 %1669, %v1851_v18  }
  0x7a   :  { %165 = vperm.xlu1 %1664, %v1994_v34  }
  0x7d   :  { %v2021_v1 = vpop.permute.xlu1 %126 }
  0x7e   :  { %v233_v38 = vpop.permute.xlu0 %232  ;;  %vm169_vm1 = vcmp.eq.s32.totalorder %v1990_v31, %v2021_v1  ;;  %v1162_v1 = vld [vmem:[#allocation2 + $0x2f0] sm:$0xff] }
  0x7f   :  { %v236_v40 = vpop.permute.xlu2 %235  ;;  %vm279_vm3 = vcmp.eq.s32.totalorder %v1990_v31, %v233_v38  ;;  %v772_v38 = vld [vmem:[#allocation2 + $0x1d0] sm:$0xff] }
  0x80   :  { %1667 = vset.pattern.permute.xlu2 %v1779_v41  ;;  %1433 = vmatmul.msk.f32.vlgmr.msra.gmra.mxu0 %vm279_vm3, %v1778_v0  ;;  %vm280_vm4 = vcmp.eq.s32.totalorder %v1990_v31, %v236_v40  ;;  %v968_v40 = vld [vmem:[#allocation2 + $0x268] sm:$0xff] }
  0x81   :  { %1053 = vperm.xlu2 %1667, %v1843_v13   ;;  %1678 = vset.pattern.permute.xlu0 %v1780_v42 }
  0x82   :  { %1666 = vset.pattern.permute.xlu1 %v1780_v42  ;;  %875 = vperm.xlu0 %1678, %v1851_v18  }
  0x83   :  { %860 = vperm.xlu1 %1666, %v1843_v13   ;;  %585 = vmatpush.msra.mxu0 %v584_v46  ;;  %v967_v46 = vld [vmem:[#allocation2 + $0x260] sm:$0xff] }
  0x85   :  { %v2036_v43 = vpop.permute.xlu1 %129  ;;  %586 = vmatpush.msra.mxu0 %v583_v47  ;;  %v770_v47 = vld [vmem:[#allocation2 + $0x1c0] sm:$0xff] }
  0x86   :  { %v2039_v44 = vpop.permute.xlu0 %253 }
  0x87   :  { %v239_v45 = vpop.permute.xlu2 %238  ;;  %587 = vmatpush.msra.mxu0 %v582_v50  ;;  %vm286_vm8 = vcmp.eq.s32.totalorder %v1990_v31, %v2039_v44  ;;  %v771_v44 = vld [vmem:[#allocation2 + $0x1c8] sm:$0xff]  ;;  %v966_v50 = vld [vmem:[#allocation2 + $0x258] sm:$0xff] }
  0x88   :  { %1434 = vmatmul.msk.f32.gmra.mxu0 %vm280_vm4, %v1778_v0  ;;  %vm281_vm5 = vcmp.eq.s32.totalorder %v1990_v31, %v239_v45 }
  0x89   :  { %1056 = vperm.xlu2 %1667, %v1877_v29  }
  0x8a   :  { %1683 = vset.pattern.permute.xlu0 %v1779_v41 }
  0x8b   :  { %863 = vperm.xlu1 %1666, %v1877_v29   ;;  %1071 = vperm.xlu0 %1683, %v1886_v32   ;;  %v581_v29 = vld [vmem:[#allocation2 + $0x160] sm:$0xff] }
  0x8c   :  { %1628 = vmatpush.msra.mxu2 %v581_v29  ;;  %588 = vmatpush.msra.mxu0 %v581_v29  ;;  %v1163_v29 = vld [vmem:[#allocation2 + $0x2f8] sm:$0xff] }
  0x8d   :  { %v2048_v13 = vpop.permute.xlu1 %141  ;;  %1164 = vmatpush.msrb.mxu1 %v1163_v29 }
  0x8e   :  { %v2051_v49 = vpop.permute.xlu0 %259  ;;  %1629 = vmatpush.msra.mxu2 %v580_v52  ;;  %589 = vmatpush.msra.mxu0 %v580_v52  ;;  %vm174_vm15 = vcmp.eq.s32.totalorder %v1990_v31, %v2048_v13  ;;  %v965_v52 = vld [vmem:[#allocation2 + $0x250] sm:$0xff] }
  0x8f   :  { %v2053_v51 = vpop.permute.xlu2 %256  ;;  %vm288_vm13 = vcmp.eq.s32.totalorder %v1990_v31, %v2051_v49  ;;  %1165 = vmatpush.msrb.mxu1 %v1162_v1 }
  0x90   :  { %1435 = vmatmul.msk.f32.gmra.mxu0 %vm281_vm5, %v1778_v0  ;;  %1630 = vmatpush.msra.mxu2 %v579_v53  ;;  %vm287_vm11 = vcmp.eq.s32.totalorder %v1990_v31, %v2053_v51  ;;  %v769_v51 = vld [vmem:[#allocation2 + $0x1b8] sm:$0xff]  ;;  %vm170_vm5 = vcmp.eq.s32.totalorder %v1990_v31, %v2036_v43  ;;  %v963_v43 = vld [vmem:[#allocation2 + $0x240] sm:$0xff] }
  0x91   :  { %1059 = vperm.xlu2 %1667, %v1841_v12   ;;  %590 = vmatpush.msra.mxu0 %v579_v53 }
  0x92   :  { %1631 = vmatpush.msra.mxu2 %v578_v56 }
  0x93   :  { %866 = vperm.xlu1 %1666, %v1841_v12   ;;  %1688 = vset.pattern.permute.xlu0 %v1776_v6  ;;  %v577_v12 = vld [vmem:[#allocation2 + $0x140] sm:$0xff] }
  0x94   :  { %501 = vperm.xlu0 %1688, %v1866_v24   ;;  %1632 = vmatpush.msra.mxu2 %v577_v12 }
  0x95   :  { %591 = vmatpush.msra.mxu0 %v578_v56  ;;  %v767_v56 = vld [vmem:[#allocation2 + $0x1a8] sm:$0xff] }
  0x96   :  { %v248_v54 = vpop.permute.xlu1 %247  ;;  %v2059_v55 = vpop.permute.xlu0 %271  ;;  %1633 = vmatpush.msra.mxu2 %v576_v59 }
  0x97   :  { %vm284_vm6 = vcmp.eq.s32.totalorder %v1990_v31, %v248_v54  ;;  %v2063_v57 = vpop.permute.xlu2 %262  ;;  %592 = vmatpush.msra.mxu0 %v577_v12  ;;  %v964_v54 = vld [vmem:[#allocation2 + $0x248] sm:$0xff] }
  0x98   :  { %1438 = vmatmul.msk.f32.gmra.mxu3 %vm284_vm6, %v1778_v0  ;;  %1634 = vmatpush.msra.mxu2 %v575_v60  ;;  %vm289_vm0 = vcmp.eq.s32.totalorder %v1990_v31, %v2063_v57 }
  0x99   :  { %1671 = vset.pattern.permute.xlu2 %v1780_v42  ;;  %593 = vmatpush.msra.mxu0 %v576_v59  ;;  %v766_v59 = vld [vmem:[#allocation2 + $0x1a0] sm:$0xff] }
  0x9a   :  { %869 = vperm.xlu2 %1671, %v1853_v19   ;;  %1635 = vmatpush.msra.mxu2 %v574_v61 }
  0x9b   :  { %1670 = vset.pattern.permute.xlu1 %v1777_v30  ;;  %594 = vmatpush.msra.mxu0 %v575_v60  ;;  %v1160_v60 = vld [vmem:[#allocation2 + $0x2e0] sm:$0xff] }
  0x9c   :  { %679 = vperm.xlu1 %1670, %v1839_v11   ;;  %1693 = vset.pattern.permute.xlu0 %v1777_v30 }
  0x9d   :  { %697 = vperm.xlu0 %1693, %v1906_v39   ;;  %1636 = vmatpush.msra.mxu2 %v573_v3 }
  0x9e   :  { %v251_v62 = vpop.permute.xlu1 %250  ;;  %595 = vmatpush.msra.mxu0 %v574_v61  ;;  %v962_v61 = vld [vmem:[#allocation2 + $0x238] sm:$0xff] }
  0x9f   :  { %vm285_vm7 = vcmp.eq.s32.totalorder %v1990_v31, %v251_v62  ;;  %v121_v63 = vpop.permute.xlu0 %120  ;;  %1637 = vmatpush.msra.mxu2 %v572_v4  ;;  %v765_v62 = vld [vmem:[#allocation2 + $0x198] sm:$0xff] }
  0xa0   :  { %1439 = vmatmul.msk.f32.gmra.mxu3 %vm285_vm7, %v1778_v0  ;;  %v2074_v2 = vpop.permute.xlu2 %150  ;;  %596 = vmatpush.msra.mxu0 %v573_v3  ;;  %vm167_vm10 = vcmp.eq.s32.totalorder %v1990_v31, %v121_v63  ;;  %v961_v63 = vld [vmem:[#allocation2 + $0x230] sm:$0xff]  ;;  %v1159_v3 = vld [vmem:[#allocation2 + $0x2d8] sm:$0xff] }
  0xa1   :  { %1638 = vmatpush.msra.mxu2 %v571_v5 }
  0xa2   :  { %1673 = vset.pattern.permute.xlu2 %v1776_v6  ;;  %597 = vmatpush.msra.mxu0 %v572_v4 }
  0xa3   :  { %489 = vperm.xlu2 %1673, %v1851_v18   ;;  %1639 = vmatpush.msra.mxu2 %v570_v7 }
  0xa4   :  { %1672 = vset.pattern.permute.xlu1 %v1779_v41  ;;  %598 = vmatpush.msra.mxu0 %v571_v5  ;;  %v764_v5 = vld [vmem:[#allocation2 + $0x190] sm:$0xff] }
  0xa5   :  { %1062 = vperm.xlu1 %1672, %v1853_v19   ;;  %1698 = vset.pattern.permute.xlu0 %v1780_v42 }
  0xa6   :  { %v242_v8 = vpop.permute.xlu1 %241  ;;  %1640 = vmatpush.msra.mxu2 %v569_v14  ;;  %890 = vperm.xlu0 %1698, %v1906_v39  }
  0xa7   :  { %vm282_vm9 = vcmp.eq.s32.totalorder %v1990_v31, %v242_v8  ;;  %v124_v9 = vpop.permute.xlu0 %123  ;;  %599 = vmatpush.msra.mxu0 %v570_v7  ;;  %v960_v7 = vld [vmem:[#allocation2 + $0x228] sm:$0xff] }
  0xa8   :  { %1436 = vmatmul.msk.f32.gmra.mxu0 %vm282_vm9, %v1778_v0  ;;  %1440 = vmatmul.msk.f32.gmra.mxu3 %vm286_vm8, %v1778_v0  ;;  %v2086_v10 = vpop.permute.xlu2 %153  ;;  %vm168_vm14 = vcmp.eq.s32.totalorder %v1990_v31, %v124_v9  ;;  %vm177_vm9 = vcmp.eq.s32.totalorder %v1990_v31, %v2074_v2  ;;  %v1158_v9 = vld [vmem:[#allocation2 + $0x2d0] sm:$0xff]  ;;  %v959_v2 = vld [vmem:[#allocation2 + $0x220] sm:$0xff] }
  0xa9   :  { %600 = vmatpush.msra.mxu0 %v569_v14  ;;  %v763_v14 = vld [vmem:[#allocation2 + $0x188] sm:$0xff] }
  0xab   :  { %1675 = vset.pattern.permute.xlu2 %v1779_v41 }
  0xac   :  { %1065 = vperm.xlu2 %1675, %v1839_v11  }
  0xad   :  { %1674 = vset.pattern.permute.xlu1 %v1780_v42 }
  0xae   :  { %872 = vperm.xlu1 %1674, %v1839_v11   ;;  %1703 = vset.pattern.permute.xlu0 %v1779_v41  ;;  %v776_v11 = vld [vmem:[#allocation2 + $0x1f0] sm:$0xff] }
  0xaf   :  { %v139_v19 = vpop.permute.xlu0 %138  ;;  %1086 = vperm.xlu0 %1703, %v1924_v48   ;;  %779 = vmatpush.msrb.mxu3 %v776_v11 }
  0xb0   :  { %vm173_vm12 = vcmp.eq.s32.totalorder %v1990_v31, %v139_v19  ;;  %v145_v15 = vpop.permute.xlu1 %144  ;;  %1441 = vmatmul.msk.f32.gmra.mxu3 %vm287_vm11, %v1778_v0  ;;  %1449 = vmatmul.msk.f32.vlgmr.msrb.gmra.mxu0 %vm167_vm10, %v1778_v0  ;;  %v2099_v16 = vpop.permute.xlu2 %156  ;;  %vm292_vm10 = vcmp.eq.s32.totalorder %v1990_v31, %v2059_v55  ;;  %v1157_v19 = vld [vmem:[#allocation2 + $0x2c8] sm:$0xff]  ;;  %v1156_v55 = vld [vmem:[#allocation2 + $0x2c0] sm:$0xff] }
  0xb1   :  { %1455 = vmatmul.msk.f32.gmra.mxu1 %vm173_vm12, %v1778_v0  ;;  %971 = vmatpush.msrb.mxu0 %v970_v22  ;;  %vm175_vm2 = vcmp.eq.s32.totalorder %v1990_v31, %v145_v15  ;;  %vm178_vm12 = vcmp.eq.s32.totalorder %v1990_v31, %v2086_v10  ;;  %v762_v15 = vld [vmem:[#allocation2 + $0x180] sm:$0xff]  ;;  %v957_v22 = vld [vmem:[#allocation2 + $0x210] sm:$0xff]  ;;  %v1155_v10 = vld [vmem:[#allocation2 + $0x2b8] sm:$0xff] }
  0xb2   :  { %780 = vmatpush.msrb.mxu3 %v775_v21 }
  0xb3   :  { %972 = vmatpush.msrb.mxu0 %v969_v37  ;;  %v1151_v37 = vld [vmem:[#allocation2 + $0x298] sm:$0xff] }
  0xb4   :  { %1677 = vset.pattern.permute.xlu2 %v1777_v30  ;;  %781 = vmatpush.msrb.mxu3 %v774_v25  ;;  %v956_v25 = vld [vmem:[#allocation2 + $0x208] sm:$0xff] }
  0xb5   :  { %685 = vperm.xlu2 %1677, %v1886_v32   ;;  %973 = vmatpush.msrb.mxu0 %v968_v40 }
  0xb6   :  { %1676 = vset.pattern.permute.xlu1 %v1776_v6  ;;  %782 = vmatpush.msrb.mxu3 %v773_v36 }
  0xb7   :  { %492 = vperm.xlu1 %1676, %v1886_v32   ;;  %v2111_v26 = vpop.permute.xlu0 %147  ;;  %1708 = vset.pattern.permute.xlu0 %v1776_v6 }
  0xb8   :  { %1442 = vmatmul.msk.f32.gmra.mxu3 %vm288_vm13, %v1778_v0  ;;  %1450 = vmatmul.msk.f32.gmra.mxu0 %vm168_vm14, %v1778_v0  ;;  %vm176_vm3 = vcmp.eq.s32.totalorder %v1990_v31, %v2111_v26  ;;  %v955_v26 = vld [vmem:[#allocation2 + $0x200] sm:$0xff] }
  0xb9   :  { %v266_v27 = vpop.permute.xlu1 %265  ;;  %1456 = vmatmul.msk.f32.gmra.mxu1 %vm174_vm15, %v1778_v0  ;;  %v2118_v33 = vpop.permute.xlu2 %477  ;;  %783 = vmatpush.msrb.mxu3 %v772_v38  ;;  %vm179_vm15 = vcmp.eq.s32.totalorder %v1990_v31, %v2099_v16  ;;  %v1152_v16 = vld [vmem:[#allocation2 + $0x2a0] sm:$0xff]  ;;  %v1150_v38 = vld [vmem:[#allocation2 + $0x290] sm:$0xff] }
  0xba   :  { %974 = vmatpush.msrb.mxu0 %v967_v46  ;;  %516 = vperm.xlu0 %1708, %v1983_v23   ;;  %vm290_vm4 = vcmp.eq.s32.totalorder %v1990_v31, %v266_v27  ;;  %vm522_vm11 = vcmp.eq.s32.totalorder %v1990_v31, %v2118_v33  ;;  %v1153_v27 = vld [vmem:[#allocation2 + $0x2a8] sm:$0xff] }
  0xbb   :  { %784 = vmatpush.msrb.mxu3 %v771_v44  ;;  %v1149_v44 = vld [vmem:[#allocation2 + $0x288] sm:$0xff] }
  0xbc   :  { %975 = vmatpush.msrb.mxu0 %v966_v50 }
  0xbd   :  { %1680 = vset.pattern.permute.xlu2 %v1776_v6  ;;  %785 = vmatpush.msrb.mxu3 %v770_v47 }
  0xbe   :  { %495 = vperm.xlu2 %1680, %v1855_v20   ;;  %976 = vmatpush.msrb.mxu0 %v965_v52 }
  0xbf   :  { %1679 = vset.pattern.permute.xlu1 %v1779_v41  ;;  %v2126_v45 = vpop.permute.xlu0 %159  ;;  %786 = vmatpush.msrb.mxu3 %v769_v51 }
  0xc0   :  { %1068 = vperm.xlu1 %1679, %v1851_v18   ;;  %1443 = vmatmul.msk.f32.gmra.mxu3 %vm289_vm0, %v1778_v0  ;;  %v768_v18 = vld [vmem:[#allocation2 + $0x1b0] sm:$0xff] }
  0xc1   :  { %v269_v13 = vpop.permute.xlu1 %268  ;;  %1451 = vmatmul.msk.f32.gmra.mxu0 %vm169_vm1, %v1778_v0  ;;  %1457 = vmatmul.msk.f32.gmra.mxu1 %vm175_vm2, %v1778_v0  ;;  %v2135_v49 = vpop.permute.xlu2 %480  ;;  %vm180_vm2 = vcmp.eq.s32.totalorder %v1990_v31, %v2126_v45 }
  0xc2   :  { %787 = vmatpush.msrb.mxu3 %v768_v18  ;;  %977 = vmatpush.msrb.mxu0 %v964_v54  ;;  %vm291_vm7 = vcmp.eq.s32.totalorder %v1990_v31, %v269_v13  ;;  %vm523_vm14 = vcmp.eq.s32.totalorder %v1990_v31, %v2135_v49  ;;  %v1148_v13 = vld [vmem:[#allocation2 + $0x280] sm:$0xff] }
  0xc3   :  { %1713 = vset.pattern.permute.xlu0 %v1777_v30 }
  0xc4   :  { %788 = vmatpush.msrb.mxu3 %v767_v56  ;;  %978 = vmatpush.msrb.mxu0 %v963_v43 }
  0xc5   :  { %712 = vperm.xlu0 %1713, %v1994_v34  }
  0xc6   :  { %1682 = vset.pattern.permute.xlu2 %v1780_v42  ;;  %789 = vmatpush.msrb.mxu3 %v766_v59 }
  0xc7   :  { %878 = vperm.xlu2 %1682, %v1886_v32   ;;  %v1161_v32 = vld [vmem:[#allocation2 + $0x2e8] sm:$0xff]  ;;  %979 = vmatpush.msrb.mxu0 %v962_v61 }
  0xc8   :  { %1681 = vset.pattern.permute.xlu1 %v1777_v30  ;;  %v487_v53 = vpop.permute.xlu0 %486  ;;  %1444 = vmatmul.msk.f32.gmra.mxu3 %vm290_vm4, %v1778_v0 }
  0xc9   :  { %vm525_vm6 = vcmp.eq.s32.totalorder %v1990_v31, %v487_v53  ;;  %688 = vperm.xlu1 %1681, %v1855_v20   ;;  %1452 = vmatmul.msk.f32.gmra.mxu0 %vm170_vm5, %v1778_v0  ;;  %v2150_v57 = vpop.permute.xlu2 %483 }
  0xca   :  { %1458 = vmatmul.msk.f32.gmra.mxu1 %vm176_vm3, %v1778_v0  ;;  %v475_v12 = vpop.permute.xlu1 %474  ;;  %1485 = vmatmul.msk.f32.vlgmr.msra.gmra.mxu2 %vm525_vm6, %v1778_v0  ;;  %vm524_vm1 = vcmp.eq.s32.totalorder %v1990_v31, %v2150_v57 }
  0xcb   :  { %1166 = vmatpush.msrb.mxu1 %v1161_v32  ;;  %vm521_vm8 = vcmp.eq.s32.totalorder %v1990_v31, %v475_v12  ;;  %790 = vmatpush.msrb.mxu3 %v765_v62 }
  0xcc   :  { %980 = vmatpush.msrb.mxu0 %v961_v63 }
  0xcd   :  { %1167 = vmatpush.msrb.mxu1 %v1160_v60  ;;  %791 = vmatpush.msrb.mxu3 %v764_v5 }
  0xce   :  { %981 = vmatpush.msrb.mxu0 %v960_v7  ;;  %1716 = vset.pattern.permute.xlu0 %v1779_v41 }
  0xcf   :  { %1685 = vset.pattern.permute.xlu2 %v1777_v30  ;;  %1168 = vmatpush.msrb.mxu1 %v1159_v3 }
  0xd0   :  { %1445 = vmatmul.msk.f32.gmra.mxu3 %vm291_vm7, %v1778_v0  ;;  %691 = vperm.xlu2 %1685, %v1895_v35  }
  0xd1   :  { %1684 = vset.pattern.permute.xlu1 %v1776_v6  ;;  %1481 = vmatmul.msk.f32.vlgmr.msra.gmra.mxu0 %vm521_vm8, %v1778_v0  ;;  %v668_v40 = vpop.permute.xlu0 %667 }
  0xd2   :  { %1459 = vmatmul.msk.f32.gmra.mxu1 %vm177_vm9, %v1778_v0  ;;  %498 = vperm.xlu1 %1684, %v1895_v35   ;;  %v2167_v4 = vpop.permute.xlu2 %670  ;;  %vm714_vm3 = vcmp.eq.s32.totalorder %v1990_v31, %v668_v40 }
  0xd3   :  { %v275_v8 = vpop.permute.xlu1 %274  ;;  %1169 = vmatpush.msrb.mxu1 %v1158_v9  ;;  %792 = vmatpush.msrb.mxu3 %v763_v14  ;;  %vm715_vm6 = vcmp.eq.s32.totalorder %v1990_v31, %v2167_v4 }
  0xd4   :  { %982 = vmatpush.msrb.mxu0 %v959_v2  ;;  %vm293_vm13 = vcmp.eq.s32.totalorder %v1990_v31, %v275_v8 }
  0xd5   :  { %1170 = vmatpush.msrb.mxu1 %v1157_v19  ;;  %793 = vmatpush.msrb.mxu3 %v762_v15 }
  0xd6   :  { %983 = vmatpush.msrb.mxu0 %v958_v17 }
  0xd7   :  { %1171 = vmatpush.msrb.mxu1 %v1156_v55 }
  0xd8   :  { %1446 = vmatmul.msk.f32.gmra.mxu3 %vm292_vm10, %v1778_v0  ;;  %1687 = vset.pattern.permute.xlu2 %v1779_v41 }
  0xd9   :  { %1482 = vmatmul.msk.f32.gmra.mxu0 %vm522_vm11, %v1778_v0  ;;  %1074 = vperm.xlu2 %1687, %v1855_v20  }
  0xda   :  { %1460 = vmatmul.msk.f32.gmra.mxu1 %vm178_vm12, %v1778_v0  ;;  %1686 = vset.pattern.permute.xlu1 %v1780_v42 }
  0xdb   :  { %881 = vperm.xlu1 %1686, %v1855_v20   ;;  %v278_v11 = vpop.permute.xlu1 %277  ;;  %v2183_v21 = vpop.permute.xlu2 %1053  ;;  %984 = vmatpush.msrb.mxu0 %v957_v22  ;;  %v1154_v20 = vld [vmem:[#allocation2 + $0x2b0] sm:$0xff]  ;;  %v1296_v22 = vld [vmem:[%s2554_s3 + $0x78] sm:$0xff] }
  0xdc   :  { %1172 = vmatpush.msrb.mxu1 %v1155_v10  ;;  %vm294_vm0 = vcmp.eq.s32.totalorder %v1990_v31, %v278_v11  ;;  %vm1100_vm11 = vcmp.eq.s32.totalorder %v1990_v31, %v2183_v21  ;;  %1301 = vmatpush.msrb.mxu2 %v1296_v22 }
  0xdd   :  { %985 = vmatpush.msrb.mxu0 %v956_v25 }
  0xde   :  { %1173 = vmatpush.msrb.mxu1 %v1154_v20 }
  0xdf   :  { %986 = vmatpush.msrb.mxu0 %v955_v26 }
  0xe0   :  { %1447 = vmatmul.msk.f32.gmra.mxu3 %vm293_vm13, %v1778_v0  ;;  %1174 = vmatpush.msrb.mxu1 %v1153_v27 }
  0xe1   :  { %1483 = vmatmul.msk.f32.gmra.mxu0 %vm523_vm14, %v1778_v0  ;;  %1690 = vset.pattern.permute.xlu2 %v1780_v42 }
  0xe2   :  { %1461 = vmatmul.msk.f32.gmra.mxu1 %vm179_vm15, %v1778_v0  ;;  %884 = vperm.xlu2 %1690, %v1895_v35  }
  0xe3   :  { %1689 = vset.pattern.permute.xlu1 %v1777_v30  ;;  %v2196_v33 = vpop.permute.xlu2 %1056  ;;  %1175 = vmatpush.msrb.mxu1 %v1152_v16 }
  0xe4   :  { %694 = vperm.xlu1 %1689, %v1866_v24   ;;  %v163_v36 = vpop.permute.xlu1 %162  ;;  %vm1101_vm14 = vcmp.eq.s32.totalorder %v1990_v31, %v2196_v33  ;;  %v2277_v32 = vpop.f32.mrf.mxu1  ;;  %v1295_v33 = vld [vmem:[%s2554_s3 + $0x70] sm:$0xff] }
  0xe5   :  { %1176 = vmatpush.msrb.mxu1 %v1151_v37  ;;  %vm181_vm4 = vcmp.eq.s32.totalorder %v1990_v31, %v163_v36  ;;  %1302 = vmatpush.msrb.mxu2 %v1295_v33  ;;  %v1282_v33 = vld [vmem:[%s2554_s3 + $0x8] sm:$0xff] }
  0xe7   :  { %1177 = vmatpush.msrb.mxu1 %v1150_v38  ;;  %v1294_v38 = vld [vmem:[%s2554_s3 + $0x68] sm:$0xff] }
  0xe8   :  { %1448 = vmatmul.msk.f32.gmra.mxu3 %vm294_vm0, %v1778_v0  ;;  %1303 = vmatpush.msrb.mxu2 %v1294_v38 }
  0xe9   :  { %1484 = vmatmul.msk.f32.gmra.mxu0 %vm524_vm1, %v1778_v0  ;;  %1178 = vmatpush.msrb.mxu1 %v1149_v44 }
  0xea   :  { %1462 = vmatmul.msk.f32.gmra.mxu1 %vm180_vm2, %v1778_v0  ;;  %1692 = vset.pattern.permute.xlu2 %v1776_v6 }
  0xeb   :  { %v2208_v46 = vpop.permute.xlu2 %1059  ;;  %504 = vperm.xlu2 %1692, %v1906_v39   ;;  %1179 = vmatpush.msrb.mxu1 %v1148_v13 }
  0xec   :  { %1691 = vset.pattern.permute.xlu1 %v1779_v41  ;;  %v166_v47 = vpop.permute.xlu1 %165  ;;  %vm1102_vm1 = vcmp.eq.s32.totalorder %v1990_v31, %v2208_v46  ;;  %v2293_v62 = vpop.f32.mrf.mxu1  ;;  %v1293_v46 = vld [vmem:[%s2554_s3 + $0x60] sm:$0xff] }
  0xed   :  { %1077 = vperm.xlu1 %1691, %v1895_v35   ;;  %vm182_vm7 = vcmp.eq.s32.totalorder %v1990_v31, %v166_v47  ;;  %v674_v35 = vpop.permute.xlu0 %673  ;;  %1304 = vmatpush.msrb.mxu2 %v1293_v46 }
  0xee   :  { %vm716_vm8 = vcmp.eq.s32.totalorder %v1990_v31, %v674_v35 }
  0xf0   :  { %1513 = vmatmul.msk.f32.vlgmr.msrb.gmra.mxu3 %vm714_vm3, %v1778_v0 }
  0xf2   :  { %1463 = vmatmul.msk.f32.gmra.mxu1 %vm181_vm4, %v1778_v0 }
  0xf3   :  { %1695 = vset.pattern.permute.xlu2 %v1779_v41 }
  0xf4   :  { %v870_v45 = vpop.permute.xlu2 %869  ;;  %1080 = vperm.xlu2 %1695, %v1866_v24  }
  0xf5   :  { %1694 = vset.pattern.permute.xlu1 %v1780_v42  ;;  %v861_v49 = vpop.permute.xlu1 %860  ;;  %vm910_vm15 = vcmp.eq.s32.totalorder %v1990_v31, %v870_v45 }
  0xf6   :  { %vm907_vm5 = vcmp.eq.s32.totalorder %v1990_v31, %v861_v49  ;;  %887 = vperm.xlu1 %1694, %v1866_v24   ;;  %v677_v24 = vpop.permute.xlu0 %676 }
  0xf7   :  { %1545 = vmatmul.msk.f32.vlgmr.msrb.gmra.mxu0 %vm907_vm5, %v1778_v0  ;;  %vm717_vm13 = vcmp.eq.s32.totalorder %v1990_v31, %v677_v24 }
  0xf8   :  { %1514 = vmatmul.msk.f32.gmra.mxu3 %vm715_vm6, %v1778_v0 }
  0xfa   :  { %1464 = vmatmul.msk.f32.gmra.mxu1 %vm182_vm7, %v1778_v0 }
  0xfc   :  { %1697 = vset.pattern.permute.xlu2 %v1777_v30 }
  0xfd   :  { %v490_v50 = vpop.permute.xlu2 %489  ;;  %v864_v51 = vpop.permute.xlu1 %863  ;;  %700 = vperm.xlu2 %1697, %v1924_v48  }
  0xfe   :  { %vm526_vm9 = vcmp.eq.s32.totalorder %v1990_v31, %v490_v50  ;;  %vm908_vm10 = vcmp.eq.s32.totalorder %v1990_v31, %v864_v51  ;;  %1696 = vset.pattern.permute.xlu1 %v1776_v6  ;;  %v683_v53 = vpop.permute.xlu0 %682  ;;  %v2269_v56 = vpop.f32.mrf.mxu0 }
  0xff   :  { %507 = vperm.xlu1 %1696, %v1924_v48   ;;  %1486 = vmatmul.msk.f32.gmra.mxu2 %vm526_vm9, %v1778_v0  ;;  %vm719_vm2 = vcmp.eq.s32.totalorder %v1990_v31, %v683_v53 }
 0x100   :  { %1546 = vmatmul.msk.f32.gmra.mxu0 %vm908_vm10, %v1778_v0  ;;  %1515 = vmatmul.msk.f32.gmra.mxu3 %vm716_vm8, %v1778_v0 }
 0x102   :  { %1577 = vmatmul.msk.f32.vlgmr.msrb.gmra.mxu1 %vm1100_vm11, %v1778_v0 }
 0x105   :  { %v867_v29 = vpop.permute.xlu1 %866  ;;  %1700 = vset.pattern.permute.xlu2 %v1776_v6 }
 0x106   :  { %vm909_vm12 = vcmp.eq.s32.totalorder %v1990_v31, %v867_v29  ;;  %510 = vperm.xlu2 %1700, %v1941_v58   ;;  %v1066_v52 = vpop.permute.xlu2 %1065  ;;  %v2287_v59 = vpop.f32.mrf.mxu0  ;;  %v1292_v29 = vld [vmem:[%s2554_s3 + $0x58] sm:$0xff] }
 0x107   :  { %1699 = vset.pattern.permute.xlu1 %v1779_v41  ;;  %vm1104_vm5 = vcmp.eq.s32.totalorder %v1990_v31, %v1066_v52  ;;  %v876_v61 = vpop.permute.xlu0 %875  ;;  %1305 = vmatpush.msrb.mxu2 %v1292_v29 }
 0x108   :  { %1547 = vmatmul.msk.f32.gmra.mxu0 %vm909_vm12, %v1778_v0  ;;  %1083 = vperm.xlu1 %1699, %v1906_v39   ;;  %v2263_v39 = vpop.f32.mrf.mxu3  ;;  %vm912_vm7 = vcmp.eq.s32.totalorder %v1990_v31, %v876_v61 }
 0x109   :  { %1516 = vmatmul.msk.f32.gmra.mxu3 %vm717_vm13, %v1778_v0 }
 0x10a   :  { %1578 = vmatmul.msk.f32.gmra.mxu1 %vm1101_vm14, %v1778_v0 }
 0x10e   :  { %v680_v1 = vpop.permute.xlu1 %679  ;;  %1702 = vset.pattern.permute.xlu2 %v1780_v42  ;;  %v2305_v4 = vpop.f32.mrf.mxu0 }
 0x10f   :  { %vm718_vm0 = vcmp.eq.s32.totalorder %v1990_v31, %v680_v1  ;;  %893 = vperm.xlu2 %1702, %v1924_v48   ;;  %v686_v18 = vpop.permute.xlu2 %685  ;;  %v1072_v9 = vpop.permute.xlu0 %1071 }
 0x110   :  { %1701 = vset.pattern.permute.xlu1 %v1777_v30  ;;  %1548 = vmatmul.msk.f32.gmra.mxu0 %vm910_vm15, %v1778_v0  ;;  %vm720_vm4 = vcmp.eq.s32.totalorder %v1990_v31, %v686_v18  ;;  %vm1106_vm12 = vcmp.eq.s32.totalorder %v1990_v31, %v1072_v9 }
 0x111   :  { %703 = vperm.xlu1 %1701, %v1941_v58   ;;  %1517 = vmatmul.msk.f32.gmra.mxu3 %vm718_vm0, %v1778_v0 }
 0x112   :  { %1579 = vmatmul.msk.f32.gmra.mxu1 %vm1102_vm1, %v1778_v0 }
 0x117   :  { %v1063_v48 = vpop.permute.xlu1 %1062  ;;  %1705 = vset.pattern.permute.xlu2 %v1777_v30  ;;  %v502_v21 = vpop.permute.xlu0 %501 }
 0x118   :  { %vm1103_vm3 = vcmp.eq.s32.totalorder %v1990_v31, %v1063_v48  ;;  %706 = vperm.xlu2 %1705, %v1875_v28   ;;  %v496_v54 = vpop.permute.xlu2 %495  ;;  %vm530_vm1 = vcmp.eq.s32.totalorder %v1990_v31, %v502_v21  ;;  %v1291_v48 = vld [vmem:[%s2554_s3 + $0x50] sm:$0xff] }
 0x119   :  { %1704 = vset.pattern.permute.xlu1 %v1776_v6  ;;  %1518 = vmatmul.msk.f32.gmra.mxu3 %vm719_vm2, %v1778_v0  ;;  %vm528_vm10 = vcmp.eq.s32.totalorder %v1990_v31, %v496_v54  ;;  %v1290_v54 = vld [vmem:[%s2554_s3 + $0x48] sm:$0xff] }
 0x11a   :  { %1580 = vmatmul.msk.f32.gmra.mxu1 %vm1103_vm3, %v1778_v0  ;;  %513 = vperm.xlu1 %1704, %v1875_v28  }
 0x11b   :  { %v2275_v57 = vpop.f32.mrf.mxu3  ;;  %1306 = vmatpush.msrb.mxu2 %v1291_v48 }
 0x11d   :  { %1307 = vmatpush.msrb.mxu2 %v1290_v54 }
 0x11f   :  { %v698_v13 = vpop.permute.xlu0 %697 }
 0x120   :  { %v873_v12 = vpop.permute.xlu1 %872  ;;  %1707 = vset.pattern.permute.xlu2 %v1779_v41 }
 0x121   :  { %vm911_vm6 = vcmp.eq.s32.totalorder %v1990_v31, %v873_v12  ;;  %1519 = vmatmul.msk.f32.gmra.mxu3 %vm720_vm4, %v1778_v0  ;;  %1089 = vperm.xlu2 %1707, %v1941_v58   ;;  %v879_v43 = vpop.permute.xlu2 %878 }
 0x122   :  { %1706 = vset.pattern.permute.xlu1 %v1780_v42  ;;  %1549 = vmatmul.msk.f32.gmra.mxu0 %vm911_vm6, %v1778_v0  ;;  %vm913_vm9 = vcmp.eq.s32.totalorder %v1990_v31, %v879_v43  ;;  %vm724_vm6 = vcmp.eq.s32.totalorder %v1990_v31, %v698_v13 }
 0x123   :  { %896 = vperm.xlu1 %1706, %v1941_v58   ;;  %v2290_v60 = vpop.f32.mrf.mxu3  ;;  %1581 = vmatmul.msk.f32.gmra.mxu1 %vm1104_vm5, %v1778_v0 }
 0x125   :  { %v2318_v8 = vpop.f32.mrf.mxu0 }
 0x127   :  { %v891_v43 = vpop.permute.xlu0 %890 }
 0x129   :  { %v493_v63 = vpop.permute.xlu1 %492  ;;  %1710 = vset.pattern.permute.xlu2 %v1780_v42 }
 0x12a   :  { %vm527_vm8 = vcmp.eq.s32.totalorder %v1990_v31, %v493_v63  ;;  %1550 = vmatmul.msk.f32.gmra.mxu0 %vm912_vm7, %v1778_v0  ;;  %899 = vperm.xlu2 %1710, %v1875_v28   ;;  %v692_v3 = vpop.permute.xlu2 %691 }
 0x12b   :  { %1709 = vset.pattern.permute.xlu1 %v1777_v30  ;;  %1487 = vmatmul.msk.f32.gmra.mxu2 %vm527_vm8, %v1778_v0  ;;  %v2302_v58 = vpop.f32.mrf.mxu3  ;;  %vm722_vm15 = vcmp.eq.s32.totalorder %v1990_v31, %v692_v3 }
 0x12c   :  { %709 = vperm.xlu1 %1709, %v1983_v23  }
 0x12d   :  { %v2333_v17 = vpop.f32.mrf.mxu0 }
 0x12e   :  { %v2307_v5 = vpop.f32.mrf.mxu1 }
 0x132   :  { %v1069_v7 = vpop.permute.xlu1 %1068  ;;  %1551 = vmatmul.msk.f32.gmra.mxu0 %vm913_vm9, %v1778_v0  ;;  %1712 = vset.pattern.permute.xlu2 %v1776_v6 }
 0x133   :  { %vm1105_vm11 = vcmp.eq.s32.totalorder %v1990_v31, %v1069_v7  ;;  %1488 = vmatmul.msk.f32.gmra.mxu2 %vm528_vm10, %v1778_v0  ;;  %v384_v30 = vpop.f32.mrf.mxu3  ;;  %519 = vperm.xlu2 %1712, %v1994_v34   ;;  %v1075_v2 = vpop.permute.xlu2 %1074 }
 0x134   :  { %1711 = vset.pattern.permute.xlu1 %v1779_v41  ;;  %1582 = vmatmul.msk.f32.gmra.mxu1 %vm1105_vm11, %v1778_v0  ;;  %vm1107_vm14 = vcmp.eq.s32.totalorder %v1990_v31, %v1075_v2  ;;  %vm917_vm11 = vcmp.eq.s32.totalorder %v1990_v31, %v891_v43 }
 0x135   :  { %1092 = vperm.xlu1 %1711, %v1875_v28   ;;  %v2348_v10 = vpop.f32.mrf.mxu0 }
 0x136   :  { %v2321_v14 = vpop.f32.mrf.mxu1  ;;  %v429_v43 = vadd.f32 %v2348_v10, %v2287_v59 }
 0x13b   :  { %v689_v6 = vpop.permute.xlu1 %688  ;;  %v387_v19 = vpop.f32.mrf.mxu3  ;;  %1715 = vset.pattern.permute.xlu2 %v1779_v41 }
 0x13c   :  { %vm721_vm13 = vcmp.eq.s32.totalorder %v1990_v31, %v689_v6  ;;  %1583 = vmatmul.msk.f32.gmra.mxu1 %vm1106_vm12, %v1778_v0  ;;  %1095 = vperm.xlu2 %1715, %v1983_v23   ;;  %v885_v55 = vpop.permute.xlu2 %884 }
 0x13d   :  { %1714 = vset.pattern.permute.xlu1 %v1780_v42  ;;  %1520 = vmatmul.msk.f32.gmra.mxu3 %vm721_vm13, %v1778_v0  ;;  %vm915_vm4 = vcmp.eq.s32.totalorder %v1990_v31, %v885_v55 }
 0x13e   :  { %902 = vperm.xlu1 %1714, %v1983_v23   ;;  %v449_v28 = vpop.f32.mrf.mxu1  ;;  %v2360_v16 = vpop.f32.mrf.mxu0 }
 0x13f   :  { %v2331_v15 = vadd.f32 %v449_v28, %v384_v30  ;;  %v1289_v30 = vld [vmem:[%s2554_s3 + $0x40] sm:$0xff]  ;;  %v1288_v28 = vld [vmem:[%s2554_s3 + $0x38] sm:$0xff]  ;;  %v432_v10 = vadd.f32 %v2360_v16, %v2305_v4 }
 0x140   :  { %1308 = vmatpush.msrb.mxu2 %v1289_v30 }
 0x142   :  { %1309 = vmatpush.msrb.mxu2 %v1288_v28 }
 0x143   :  { %v390_v42 = vpop.f32.mrf.mxu3 }
 0x144   :  { %v499_v41 = vpop.permute.xlu1 %498  ;;  %1584 = vmatmul.msk.f32.gmra.mxu1 %vm1107_vm14, %v1778_v0  ;;  %1098 = vperm.xlu2 %1715, %v1994_v34  }
 0x145   :  { %vm529_vm0 = vcmp.eq.s32.totalorder %v1990_v31, %v499_v41  ;;  %1521 = vmatmul.msk.f32.gmra.mxu3 %vm722_vm15, %v1778_v0  ;;  %v505_v25 = vpop.permute.xlu2 %504  ;;  %v1287_v41 = vld [vmem:[%s2554_s3 + $0x30] sm:$0xff] }
 0x146   :  { %905 = vperm.xlu1 %1714, %v1994_v34   ;;  %1489 = vmatmul.msk.f32.gmra.mxu2 %vm529_vm0, %v1778_v0  ;;  %vm531_vm3 = vcmp.eq.s32.totalorder %v1990_v31, %v505_v25  ;;  %v2376_v49 = vpop.f32.mrf.mxu0  ;;  %v1285_v25 = vld [vmem:[%s2554_s3 + $0x20] sm:$0xff] }
 0x147   :  { %v452_v23 = vpop.f32.mrf.mxu1  ;;  %1310 = vmatpush.msrb.mxu2 %v1287_v41  ;;  %v435_v4 = vadd.f32 %v2376_v49, %v2318_v8  ;;  %v438_v8 = vadd.f32 %v2277_v32, %v2263_v39  ;;  %v441_v32 = vadd.f32 %v2293_v62, %v2275_v57 }
 0x148   :  { %v2343_v11 = vadd.f32 %v452_v23, %v387_v19 }
 0x14b   :  { %v393_v34 = vpop.f32.mrf.mxu3 }
 0x14d   :  { %v882_v20 = vpop.permute.xlu1 %881 }
 0x14e   :  { %vm914_vm2 = vcmp.eq.s32.totalorder %v1990_v31, %v882_v20  ;;  %1490 = vmatmul.msk.f32.gmra.mxu2 %vm530_vm1, %v1778_v0  ;;  %v1081_v36 = vpop.permute.xlu2 %1080  ;;  %v2397_v12 = vpop.f32.mrf.mxu0 }
 0x14f   :  { %v455_v26 = vpop.f32.mrf.mxu1  ;;  %1552 = vmatmul.msk.f32.gmra.mxu0 %vm914_vm2, %v1778_v0  ;;  %vm1109_vm9 = vcmp.eq.s32.totalorder %v1990_v31, %v1081_v36  ;;  %v1087_v20 = vpop.permute.xlu0 %1086 }
 0x150   :  { %v2354_v27 = vadd.f32 %v455_v26, %v390_v42  ;;  %v1286_v42 = vld [vmem:[%s2554_s3 + $0x28] sm:$0xff]  ;;  %vm1111_vm0 = vcmp.eq.s32.totalorder %v1990_v31, %v1087_v20  ;;  %v1283_v26 = vld [vmem:[%s2554_s3 + $0x10] sm:$0xff] }
 0x151   :  { %1311 = vmatpush.msrb.mxu2 %v1286_v42 }
 0x153   :  { %v396_v47 = vpop.f32.mrf.mxu3  ;;  %1312 = vmatpush.msrb.mxu2 %v1285_v25 }
 0x156   :  { %v695_v37 = vpop.permute.xlu1 %694  ;;  %1491 = vmatmul.msk.f32.gmra.mxu2 %vm531_vm3, %v1778_v0  ;;  %v2410_v2 = vpop.f32.mrf.mxu0 }
 0x157   :  { %vm723_vm5 = vcmp.eq.s32.totalorder %v1990_v31, %v695_v37  ;;  %v458_v40 = vpop.f32.mrf.mxu1  ;;  %1553 = vmatmul.msk.f32.gmra.mxu0 %vm915_vm4, %v1778_v0  ;;  %v701_v45 = vpop.permute.xlu2 %700  ;;  %v1281_v37 = vld [vmem:[%s2554_s3] sm:$0xff] }
 0x158   :  { %v2369_v44 = vadd.f32 %v458_v40, %v393_v34  ;;  %1522 = vmatmul.msk.f32.gmra.mxu3 %vm723_vm5, %v1778_v0  ;;  %vm725_vm8 = vcmp.eq.s32.totalorder %v1990_v31, %v701_v45  ;;  %v1284_v34 = vld [vmem:[%s2554_s3 + $0x18] sm:$0xff] }
 0x159   :  { %1313 = vmatpush.msrb.mxu2 %v1284_v34 }
 0x15b   :  { %v399_v24 = vpop.f32.mrf.mxu3  ;;  %1314 = vmatpush.msrb.mxu2 %v1283_v26 }
 0x15d   :  { %1315 = vmatpush.msrb.mxu2 %v1282_v33 }
 0x15e   :  { %v608_v22 = vpop.f32.mrf.mxu0 }
 0x15f   :  { %v461_v35 = vpop.f32.mrf.mxu1  ;;  %v1078_v50 = vpop.permute.xlu1 %1077  ;;  %1316 = vmatpush.msrb.mxu2 %v1281_v37  ;;  %v652_v28 = vadd.f32 %v608_v22, %v432_v10 }
 0x160   :  { %v2378_v51 = vadd.f32 %v461_v35, %v396_v47  ;;  %vm1108_vm7 = vcmp.eq.s32.totalorder %v1990_v31, %v1078_v50  ;;  %1523 = vmatmul.msk.f32.gmra.mxu3 %vm724_vm6, %v1778_v0  ;;  %v511_v52 = vpop.permute.xlu2 %510  ;;  %v517_v35 = vpop.permute.xlu0 %516 }
 0x161   :  { %1585 = vmatmul.msk.f32.gmra.mxu1 %vm1108_vm7, %v1778_v0  ;;  %vm533_vm14 = vcmp.eq.s32.totalorder %v1990_v31, %v511_v52  ;;  %vm535_vm5 = vcmp.eq.s32.totalorder %v1990_v31, %v517_v35 }
 0x163   :  { %v402_v61 = vpop.f32.mrf.mxu3 }
 0x166   :  { %v611_v40 = vpop.f32.mrf.mxu0 }
 0x167   :  { %v464_v1 = vpop.f32.mrf.mxu1  ;;  %v653_v33 = vadd.f32 %v611_v40, %v435_v4 }
 0x168   :  { %v2388_v18 = vadd.f32 %v464_v1, %v399_v24  ;;  %v888_v53 = vpop.permute.xlu1 %887  ;;  %1524 = vmatmul.msk.f32.gmra.mxu3 %vm725_vm8, %v1778_v0  ;;  %v426_v24 = vadd.f32 %v2333_v17, %v2269_v56  ;;  %v651_v17 = vadd.f32 %v2410_v2, %v429_v43 }
 0x169   :  { %vm916_vm10 = vcmp.eq.s32.totalorder %v1990_v31, %v888_v53  ;;  %1586 = vmatmul.msk.f32.gmra.mxu1 %vm1109_vm9, %v1778_v0  ;;  %v894_v7 = vpop.permute.xlu2 %893 }
 0x16a   :  { %1554 = vmatmul.msk.f32.gmra.mxu0 %vm916_vm10, %v1778_v0  ;;  %vm918_vm13 = vcmp.eq.s32.totalorder %v1990_v31, %v894_v7  ;;  %v650_v52 = vadd.f32 %v2397_v12, %v426_v24 }
 0x16b   :  { %v405_v6 = vpop.f32.mrf.mxu3 }
 0x16f   :  { %v467_v63 = vpop.f32.mrf.mxu1 }
 0x170   :  { %v2403_v3 = vadd.f32 %v467_v63, %v402_v61  ;;  %v2469_v63 = vld [vmem:[%s2553_s2] ss:$0 sm:$0xff] }
 0x171   :  { %v508_v9 = vpop.permute.xlu1 %507 }
 0x172   :  { %vm532_vm12 = vcmp.eq.s32.totalorder %v1990_v31, %v508_v9  ;;  %1555 = vmatmul.msk.f32.gmra.mxu0 %vm917_vm11, %v1778_v0  ;;  %v707_v21 = vpop.permute.xlu2 %706 }
 0x173   :  { %1492 = vmatmul.msk.f32.gmra.mxu2 %vm532_vm12, %v1778_v0  ;;  %v795_v46 = vpop.f32.mrf.mxu3  ;;  %vm727_vm3 = vcmp.eq.s32.totalorder %v1990_v31, %v707_v21 }
 0x174   :  { %v988_v45 = vpop.f32.mrf.mxu0  ;;  %v843_v53 = vadd.f32 %v795_v46, %v650_v52  ;;  %v614_v46 = vpop.f32.mrf.mxu2 }
 0x176   :  { %v1036_v61 = vadd.f32 %v988_v45, %v843_v53 }
 0x177   :  { %v470_v19 = vpop.f32.mrf.mxu1 }
 0x178   :  { %v2418_v55 = vadd.f32 %v470_v19, %v405_v6  ;;  %v713_v6 = vpop.permute.xlu0 %712 }
 0x179   :  { %vm729_vm10 = vcmp.eq.s32.totalorder %v1990_v31, %v713_v6 }
 0x17a   :  { %v1084_v23 = vpop.permute.xlu1 %1083  ;;  %1556 = vmatmul.msk.f32.gmra.mxu0 %vm918_vm13, %v1778_v0 }
 0x17b   :  { %vm1110_vm15 = vcmp.eq.s32.totalorder %v1990_v31, %v1084_v23  ;;  %1493 = vmatmul.msk.f32.gmra.mxu2 %vm533_vm14, %v1778_v0  ;;  %v1090_v38 = vpop.permute.xlu2 %1089  ;;  %v798_v29 = vpop.f32.mrf.mxu3 }
 0x17c   :  { %1587 = vmatmul.msk.f32.gmra.mxu1 %vm1110_vm15, %v1778_v0  ;;  %vm1112_vm2 = vcmp.eq.s32.totalorder %v1990_v31, %v1090_v38  ;;  %v844_v30 = vadd.f32 %v798_v29, %v651_v17 }
 0x17d   :  { %v991_v54 = vpop.f32.mrf.mxu0 }
 0x17e   :  { %v1037_v2 = vadd.f32 %v991_v54, %v844_v30 }
 0x17f   :  { %v1181_v50 = vpop.f32.mrf.mxu1 }
 0x180   :  { %v1229_v12 = vadd.f32 %v1181_v50, %v1036_v61  ;;  %v654_v50 = vadd.f32 %v614_v46, %v438_v8 }
 0x182   :  { %v1249_v59 = vadd.f32 %v2469_v63, %v1229_v12  ;;  %v617_v53 = vpop.f32.mrf.mxu2 }
 0x183   :  { %v704_v36 = vpop.permute.xlu1 %703  ;;  %v801_v7 = vpop.f32.mrf.mxu3 }
 0x184   :  { %vm726_vm1 = vcmp.eq.s32.totalorder %v1990_v31, %v704_v36  ;;  %1588 = vmatmul.msk.f32.gmra.mxu1 %vm1111_vm0, %v1778_v0  ;;  %v900_v13 = vpop.permute.xlu2 %899  ;;  %v1265_v41 = vmax.f32 %v1249_v59, 0.0  ;;  %v845_v21 = vadd.f32 %v801_v7, %v652_v28  ;;  %v655_v7 = vadd.f32 %v617_v53, %v441_v32 }
 0x185   :  { %1525 = vmatmul.msk.f32.gmra.mxu3 %vm726_vm1, %v1778_v0  ;;  %vm920_vm8 = vcmp.eq.s32.totalorder %v1990_v31, %v900_v13  ;;  %v994_v19 = vpop.f32.mrf.mxu0  ;;  %v444_v59 = vadd.f32 %v2307_v5, %v2290_v60 }
 0x186   :  { %v1038_v16 = vadd.f32 %v994_v19, %v845_v21  ;;  %v447_v21 = vadd.f32 %v2321_v14, %v2302_v58 }
 0x187   :  { %v1184_v56 = vpop.f32.mrf.mxu1 }
 0x188   :  { %v1230_v42 = vadd.f32 %v1184_v56, %v1037_v2 }
 0x18a   :  { %v1250_v34 = vadd.f32 %v2469_v63, %v1230_v42 }
 0x18c   :  { %v514_v47 = vpop.permute.xlu1 %513  ;;  %1589 = vmatmul.msk.f32.gmra.mxu1 %vm1112_vm2, %v1778_v0  ;;  %v804_v25 = vpop.f32.mrf.mxu3  ;;  %v1266_v37 = vmax.f32 %v1250_v34, 0.0 }
 0x18d   :  { %vm534_vm4 = vcmp.eq.s32.totalorder %v1990_v31, %v514_v47  ;;  %1526 = vmatmul.msk.f32.gmra.mxu3 %vm727_vm3, %v1778_v0  ;;  %v520_v48 = vpop.permute.xlu2 %519  ;;  %v997_v22 = vpop.f32.mrf.mxu0  ;;  %v846_v38 = vadd.f32 %v804_v25, %v653_v33 }
 0x18e   :  { %1494 = vmatmul.msk.f32.gmra.mxu2 %vm534_vm4, %v1778_v0  ;;  %vm536_vm7 = vcmp.eq.s32.totalorder %v1990_v31, %v520_v48 }
 0x18f   :  { %v1187_v23 = vpop.f32.mrf.mxu1  ;;  %v1039_v49 = vadd.f32 %v997_v22, %v846_v38 }
 0x190   :  { %v1231_v36 = vadd.f32 %v1187_v23, %v1038_v16 }
 0x192   :  { %v1251_v45 = vadd.f32 %v2469_v63, %v1231_v36 }
 0x194   :  { %v807_v35 = vpop.f32.mrf.mxu3  ;;  %v1267_v29 = vmax.f32 %v1251_v45, 0.0 }
 0x195   :  { %v897_v1 = vpop.permute.xlu1 %896 }
 0x196   :  { %vm919_vm6 = vcmp.eq.s32.totalorder %v1990_v31, %v897_v1  ;;  %1495 = vmatmul.msk.f32.gmra.mxu2 %vm535_vm5, %v1778_v0  ;;  %v1096_v26 = vpop.permute.xlu2 %1095  ;;  %v847_v1 = vadd.f32 %v807_v35, %v654_v50 }
 0x197   :  { %1557 = vmatmul.msk.f32.gmra.mxu0 %vm919_vm6, %v1778_v0  ;;  %vm1114_vm12 = vcmp.eq.s32.totalorder %v1990_v31, %v1096_v26  ;;  %v1190_v47 = vpop.f32.mrf.mxu1 }
 0x198   :  { %v1232_v24 = vadd.f32 %v1190_v47, %v1039_v49 }
 0x19a   :  { %v1252_v61 = vadd.f32 %v2469_v63, %v1232_v24 }
 0x19c   :  { %v810_v39 = vpop.f32.mrf.mxu3  ;;  %v1268_v17 = vmax.f32 %v1252_v61, 0.0 }
 0x19d   :  { %v848_v10 = vadd.f32 %v810_v39, %v655_v7 }
 0x19e   :  { %v710_v9 = vpop.permute.xlu1 %709  ;;  %1496 = vmatmul.msk.f32.gmra.mxu2 %vm536_vm7, %v1778_v0  ;;  %v1099_v52 = vpop.permute.xlu2 %1098 }
 0x19f   :  { %vm728_vm9 = vcmp.eq.s32.totalorder %v1990_v31, %v710_v9  ;;  %1558 = vmatmul.msk.f32.gmra.mxu0 %vm920_vm8, %v1778_v0  ;;  %v1000_v40 = vpop.f32.mrf.mxu0  ;;  %vm1115_vm14 = vcmp.eq.s32.totalorder %v1990_v31, %v1099_v52 }
 0x1a0   :  { %1527 = vmatmul.msk.f32.gmra.mxu3 %vm728_vm9, %v1778_v0  ;;  %v1193_v48 = vpop.f32.mrf.mxu1  ;;  %v1040_v54 = vadd.f32 %v1000_v40, %v847_v1 }
 0x1a2   :  { %v1233_v56 = vadd.f32 %v1193_v48, %v1040_v54 }
 0x1a6   :  { %1317 = vmatmul.f32.vlgmr.msrb.gmra.mxu2 %v1265_v41 }
 0x1a7   :  { %v1093_v20 = vpop.permute.xlu1 %1092  ;;  %v1003_v12 = vpop.f32.mrf.mxu0 }
 0x1a8   :  { %vm1113_vm11 = vcmp.eq.s32.totalorder %v1990_v31, %v1093_v20  ;;  %1528 = vmatmul.msk.f32.gmra.mxu3 %vm729_vm10, %v1778_v0  ;;  %v1041_v2 = vadd.f32 %v1003_v12, %v848_v10 }
 0x1a9   :  { %1590 = vmatmul.msk.f32.gmra.mxu1 %vm1113_vm11, %v1778_v0 }
 0x1ae   :  { %1320 = vmatmul.f32.gmra.mxu2 %v1266_v37  ;;  %v620_v30 = vpop.f32.mrf.mxu2 }
 0x1af   :  { %v656_v6 = vadd.f32 %v620_v30, %v444_v59  ;;  %v1006_v41 = vpop.f32.mrf.mxu0 }
 0x1b0   :  { %v903_v13 = vpop.permute.xlu1 %902 }
 0x1b1   :  { %vm921_vm13 = vcmp.eq.s32.totalorder %v1990_v31, %v903_v13  ;;  %1591 = vmatmul.msk.f32.gmra.mxu1 %vm1114_vm12, %v1778_v0  ;;  %v1196_v9 = vpop.f32.mrf.mxu1 }
 0x1b2   :  { %1559 = vmatmul.msk.f32.gmra.mxu0 %vm921_vm13, %v1778_v0  ;;  %v1234_v19 = vadd.f32 %v1196_v9, %v1041_v2 }
 0x1b4   :  { %v1254_v62 = vadd.f32 %v2469_v63, %v1234_v19 }
 0x1b6   :  { %1323 = vmatmul.f32.gmra.mxu2 %v1267_v29  ;;  %v623_v42 = vpop.f32.mrf.mxu2  ;;  %v1270_v34 = vmax.f32 %v1254_v62, 0.0 }
 0x1b7   :  { %v657_v5 = vadd.f32 %v623_v42, %v447_v21 }
 0x1b8   :  { %v906_v43 = vpop.permute.xlu1 %905 }
 0x1b9   :  { %vm922_vm15 = vcmp.eq.s32.totalorder %v1990_v31, %v906_v43  ;;  %1592 = vmatmul.msk.f32.gmra.mxu1 %vm1115_vm14, %v1778_v0  ;;  %v1253_v31 = vadd.f32 %v2469_v63, %v1233_v56  ;;  %v1199_v23 = vpop.f32.mrf.mxu1 }
 0x1ba   :  { %1560 = vmatmul.msk.f32.gmra.mxu0 %vm922_vm15, %v1778_v0  ;;  %v813_v0 = vpop.f32.mrf.mxu3 }
 0x1bb   :  { %v1269_v28 = vmax.f32 %v1253_v31, 0.0  ;;  %v849_v57 = vadd.f32 %v813_v0, %v656_v6 }
 0x1bd   :  { %v1042_v25 = vadd.f32 %v1006_v41, %v849_v57 }
 0x1be   :  { %1326 = vmatmul.f32.gmra.mxu2 %v1268_v17 }
 0x1bf   :  { %v1235_v20 = vadd.f32 %v1199_v23, %v1042_v25 }
 0x1c1   :  { %v1255_v26 = vadd.f32 %v2469_v63, %v1235_v20  ;;  %v1202_v33 = vpop.f32.mrf.mxu1 }
 0x1c2   :  { %v816_v60 = vpop.f32.mrf.mxu3 }
 0x1c3   :  { %v850_v16 = vadd.f32 %v816_v60, %v657_v5  ;;  %v1271_v38 = vmax.f32 %v1255_v26, 0.0 }
 0x1c6   :  { %1329 = vmatmul.f32.gmra.mxu2 %v1269_v28 }
 0x1c9   :  { %v626_v36 = vpop.f32.mrf.mxu2 }
 0x1ca   :  { %v658_v46 = vadd.f32 %v626_v36, %v2331_v15  ;;  %v819_v47 = vpop.f32.mrf.mxu3 }
 0x1cc   :  { %v1009_v4 = vpop.f32.mrf.mxu0  ;;  %v851_v13 = vadd.f32 %v819_v47, %v658_v46 }
 0x1cd   :  { %v1043_v22 = vadd.f32 %v1009_v4, %v850_v16 }
 0x1ce   :  { %1332 = vmatmul.f32.gmra.mxu2 %v1270_v34 }
 0x1cf   :  { %v1236_v37 = vadd.f32 %v1202_v33, %v1043_v22 }
 0x1d1   :  { %v1256_v58 = vadd.f32 %v2469_v63, %v1236_v37  ;;  %v629_v40 = vpop.f32.mrf.mxu2 }
 0x1d2   :  { %v659_v52 = vadd.f32 %v629_v40, %v2343_v11 }
 0x1d3   :  { %v1272_v45 = vmax.f32 %v1256_v58, 0.0 }
 0x1d4   :  { %v1012_v14 = vpop.f32.mrf.mxu0 }
 0x1d5   :  { %v1044_v35 = vadd.f32 %v1012_v14, %v851_v13 }
 0x1d6   :  { %1335 = vmatmul.f32.gmra.mxu2 %v1271_v38 }
 0x1d9   :  { %v632_v61 = vpop.f32.mrf.mxu2 }
 0x1da   :  { %v660_v56 = vadd.f32 %v632_v61, %v2354_v27 }
 0x1db   :  { %v822_v24 = vpop.f32.mrf.mxu3 }
 0x1dc   :  { %v852_v1 = vadd.f32 %v822_v24, %v659_v52 }
 0x1de   :  { %v1205_v8 = vpop.f32.mrf.mxu1  ;;  %1338 = vmatmul.f32.gmra.mxu2 %v1272_v45 }
 0x1df   :  { %v1237_v49 = vadd.f32 %v1205_v8, %v1044_v35 }
 0x1e1   :  { %v1257_v50 = vadd.f32 %v2469_v63, %v1237_v49 }
 0x1e3   :  { %v1273_v29 = vmax.f32 %v1257_v50, 0.0  ;;  %v825_v32 = vpop.f32.mrf.mxu3 }
 0x1e4   :  { %v853_v12 = vadd.f32 %v825_v32, %v660_v56 }
 0x1e6   :  { %1341 = vmatmul.f32.gmra.mxu2 %v1273_v29  ;;  %v1208_v53 = vpop.f32.mrf.mxu1 }
 0x1e7   :  { %v1015_v15 = vpop.f32.mrf.mxu0 }
 0x1e8   :  { %v1045_v48 = vadd.f32 %v1015_v15, %v852_v1 }
 0x1ea   :  { %v1238_v54 = vadd.f32 %v1208_v53, %v1045_v48 }
 0x1eb   :  { %v828_v9 = vpop.f32.mrf.mxu3 }
 0x1ec   :  { %v1258_v43 = vadd.f32 %v2469_v63, %v1238_v54 }
 0x1ee   :  { %v1274_v39 = vmax.f32 %v1258_v43, 0.0 }
 0x1ef   :  { %v1018_v17 = vpop.f32.mrf.mxu0 }
 0x1f0   :  { %1344 = vmatmul.f32.gmra.mxu2 %v1274_v39  ;;  %v1046_v30 = vadd.f32 %v1018_v17, %v853_v12 }
 0x1f6   :  { %v635_v7 = vpop.f32.mrf.mxu2 }
 0x1f7   :  { %v661_v11 = vadd.f32 %v635_v7, %v2369_v44  ;;  %v1021_v6 = vpop.f32.mrf.mxu0 }
 0x1f9   :  { %v1211_v59 = vpop.f32.mrf.mxu1  ;;  %v854_v31 = vadd.f32 %v828_v9, %v661_v11 }
 0x1fa   :  { %v1239_v10 = vadd.f32 %v1211_v59, %v1046_v30 }
 0x1fb   :  { %v1047_v19 = vadd.f32 %v1021_v6, %v854_v31 }
 0x1fc   :  { %v1259_v2 = vadd.f32 %v2469_v63, %v1239_v10 }
 0x1fe   :  { %v1275_v0 = vmax.f32 %v1259_v2, 0.0  ;;  %v638_v62 = vpop.f32.mrf.mxu2 }
 0x1ff   :  { %v662_v44 = vadd.f32 %v638_v62, %v2378_v51  ;;  %v2522_v51 = vld [vmem:[%s2555_s4] ss:$0 sm:$0xff]  ;;  %s1781_s4 = smov [#allocation5]  }
 0x200   :  { %1347 = vmatmul.f32.gmra.mxu2 %v1275_v0  ;;  %s1386_s15 = sshll.u32 %s1781_s4, 4  ;;  %s1387_s15 = int_to_ptr.vmem [resolvable:$true] %s1386_s15 }
 0x201   :  { %v1214_v28 = vpop.f32.mrf.mxu1 }
 0x202   :  { %v1240_v41 = vadd.f32 %v1214_v28, %v1047_v19 }
 0x204   :  { %v1260_v27 = vadd.f32 %v2469_v63, %v1240_v41 }
 0x206   :  { %v1276_v57 = vmax.f32 %v1260_v27, 0.0 }
 0x208   :  { %1350 = vmatmul.f32.gmra.mxu2 %v1276_v57  ;;  %v831_v42 = vpop.f32.mrf.mxu3 }
 0x209   :  { %v855_v21 = vadd.f32 %v831_v42, %v662_v44  ;;  %v1217_v60 = vpop.f32.mrf.mxu1 }
 0x210   :  { %v834_v26 = vpop.f32.mrf.mxu3 }
 0x211   :  { %v641_v23 = vpop.f32.mrf.mxu2 }
 0x212   :  { %v663_v22 = vadd.f32 %v641_v23, %v2388_v18 }
 0x214   :  { %v1024_v25 = vpop.f32.mrf.mxu0  ;;  %v856_v37 = vadd.f32 %v834_v26, %v663_v22 }
 0x215   :  { %v1048_v5 = vadd.f32 %v1024_v25, %v855_v21 }
 0x217   :  { %v1241_v20 = vadd.f32 %v1217_v60, %v1048_v5 }
 0x219   :  { %v1261_v34 = vadd.f32 %v2469_v63, %v1241_v20  ;;  %v644_v4 = vpop.f32.mrf.mxu2 }
 0x21a   :  { %v664_v18 = vadd.f32 %v644_v4, %v2403_v3 }
 0x21b   :  { %v1277_v16 = vmax.f32 %v1261_v34, 0.0 }
 0x21c   :  { %v1027_v36 = vpop.f32.mrf.mxu0 }
 0x21d   :  { %1353 = vmatmul.f32.gmra.mxu2 %v1277_v16  ;;  %v1049_v38 = vadd.f32 %v1027_v36, %v856_v37 }
 0x221   :  { %v647_v33 = vpop.f32.mrf.mxu2 }
 0x222   :  { %v665_v15 = vadd.f32 %v647_v33, %v2418_v55 }
 0x223   :  { %v837_v58 = vpop.f32.mrf.mxu3 }
 0x224   :  { %v857_v8 = vadd.f32 %v837_v58, %v664_v18 }
 0x226   :  { %v1220_v46 = vpop.f32.mrf.mxu1 }
 0x227   :  { %v1242_v47 = vadd.f32 %v1220_v46, %v1049_v38 }
 0x229   :  { %v1262_v14 = vadd.f32 %v2469_v63, %v1242_v47  ;;  %v1318_v13 = vpop.f32.mrf.mxu2 }
 0x22a   :  { %v1319_v45 = vadd.f32 %v2522_v51, %v1318_v13 }
 0x22b   :  { %v1278_v35 = vmax.f32 %v1262_v14, 0.0  ;;  %v840_v1 = vpop.f32.mrf.mxu3 }
 0x22c   :  { %1366 = vst [vmem:[#allocation5] sm:$0xff] %v1319_v45  ;;  %v858_v48 = vadd.f32 %v840_v1, %v665_v15 }
 0x22d   :  { %1356 = vmatmul.f32.gmra.mxu2 %v1278_v35 }
 0x22e   :  { %v1223_v49 = vpop.f32.mrf.mxu1 }
 0x22f   :  { %v1030_v40 = vpop.f32.mrf.mxu0 }
 0x230   :  { %v1050_v50 = vadd.f32 %v1030_v40, %v857_v8 }
 0x231   :  { %v1321_v24 = vpop.f32.mrf.mxu2 }
 0x232   :  { %v1243_v29 = vadd.f32 %v1223_v49, %v1050_v50  ;;  %v1322_v52 = vadd.f32 %v2522_v51, %v1321_v24 }
 0x234   :  { %1367 = vst [vmem:[#allocation5 + $0x8] sm:$0xff] %v1322_v52  ;;  %v1263_v53 = vadd.f32 %v2469_v63, %v1243_v29 }
 0x236   :  { %v1279_v54 = vmax.f32 %v1263_v53, 0.0  ;;  %v1226_v61 = vpop.f32.mrf.mxu1 }
 0x237   :  { %v1033_v43 = vpop.f32.mrf.mxu0 }
 0x238   :  { %v1051_v3 = vadd.f32 %v1033_v43, %v858_v48  ;;  %1359 = vmatmul.f32.gmra.mxu2 %v1279_v54 }
 0x239   :  { %v1324_v39 = vpop.f32.mrf.mxu2 }
 0x23a   :  { %v1244_v32 = vadd.f32 %v1226_v61, %v1051_v3  ;;  %v1325_v56 = vadd.f32 %v2522_v51, %v1324_v39 }
 0x23c   :  { %1368 = vst [vmem:[#allocation5 + $0x10] sm:$0xff] %v1325_v56  ;;  %v1264_v17 = vadd.f32 %v2469_v63, %v1244_v32 }
 0x23e   :  { %v1280_v12 = vmax.f32 %v1264_v17, 0.0 }
 0x240   :  { %1362 = vmatmul.f32.gmra.mxu2 %v1280_v12 }
 0x241   :  { %v1327_v7 = vpop.f32.mrf.mxu2 }
 0x242   :  { %v1328_v55 = vadd.f32 %v2522_v51, %v1327_v7 }
 0x244   :  { %1369 = vst [vmem:[#allocation5 + $0x18] sm:$0xff] %v1328_v55 }
 0x249   :  { %v1330_v30 = vpop.f32.mrf.mxu2 }
 0x24a   :  { %v1331_v11 = vadd.f32 %v2522_v51, %v1330_v30 }
 0x24c   :  { %1370 = vst [vmem:[#allocation5 + $0x20] sm:$0xff] %v1331_v11 }
 0x251   :  { %v1333_v9 = vpop.f32.mrf.mxu2 }
 0x252   :  { %v1334_v59 = vadd.f32 %v2522_v51, %v1333_v9 }
 0x254   :  { %1371 = vst [vmem:[#allocation5 + $0x28] sm:$0xff] %v1334_v59 }
 0x259   :  { %v1336_v10 = vpop.f32.mrf.mxu2 }
 0x25a   :  { %v1337_v31 = vadd.f32 %v2522_v51, %v1336_v10 }
 0x25c   :  { %1372 = vst [vmem:[#allocation5 + $0x30] sm:$0xff] %v1337_v31 }
 0x261   :  { %v1339_v2 = vpop.f32.mrf.mxu2 }
 0x262   :  { %v1340_v63 = vadd.f32 %v2522_v51, %v1339_v2 }
 0x264   :  { %1373 = vst [vmem:[#allocation5 + $0x38] sm:$0xff] %v1340_v63 }
 0x269   :  { %v1342_v6 = vpop.f32.mrf.mxu2 }
 0x26a   :  { %v1343_v0 = vadd.f32 %v2522_v51, %v1342_v6 }
 0x26c   :  { %1374 = vst [vmem:[#allocation5 + $0x40] sm:$0xff] %v1343_v0 }
 0x273   :  { %v1345_v19 = vpop.f32.mrf.mxu2 }
 0x274   :  { %v1346_v28 = vadd.f32 %v2522_v51, %v1345_v19 }
 0x276   :  { %1375 = vst [vmem:[#allocation5 + $0x48] sm:$0xff] %v1346_v28 }
 0x283   :  { %v1348_v41 = vpop.f32.mrf.mxu2 }
 0x284   :  { %v1349_v27 = vadd.f32 %v2522_v51, %v1348_v41 }
 0x286   :  { %1376 = vst [vmem:[#allocation5 + $0x50] sm:$0xff] %v1349_v27 }
 0x28b   :  { %v1351_v57 = vpop.f32.mrf.mxu2 }
 0x28c   :  { %v1352_v62 = vadd.f32 %v2522_v51, %v1351_v57 }
 0x28e   :  { %1377 = vst [vmem:[#allocation5 + $0x58] sm:$0xff] %v1352_v62 }
 0x2a0   :  { %v1354_v42 = vpop.f32.mrf.mxu2 }
 0x2a1   :  { %v1355_v44 = vadd.f32 %v2522_v51, %v1354_v42 }
 0x2a3   :  { %1378 = vst [vmem:[#allocation5 + $0x60] sm:$0xff] %v1355_v44 }
 0x2b0   :  { %v1357_v23 = vpop.f32.mrf.mxu2 }
 0x2b1   :  { %v1358_v21 = vadd.f32 %v2522_v51, %v1357_v23 }
 0x2b3   :  { %1379 = vst [vmem:[#allocation5 + $0x68] sm:$0xff] %v1358_v21 }
 0x2bb   :  { %v1360_v25 = vpop.f32.mrf.mxu2 }
 0x2bc   :  { %v1361_v60 = vadd.f32 %v2522_v51, %v1360_v25 }
 0x2be   :  { %1380 = vst [vmem:[#allocation5 + $0x70] sm:$0xff] %v1361_v60 }
 0x2c3   :  { %v1363_v5 = vpop.f32.mrf.mxu2 }
 0x2c4   :  { %v1364_v20 = vadd.f32 %v2522_v51, %v1363_v5 }
 0x2c6   :  { %1381 = vst [vmem:[#allocation5 + $0x78] sm:$0xff] %v1364_v20 }
 0x2c7   :  { %1394 = dma.vmem_to_hbm [thread:$0]  %s1387_s15, 2048, %s1389_s18, [#allocation4], %s1772_s23, %s1772_s23, %s1773_s24  }
 0x2c8   :  { %1769 = dma.done.wait [#allocation4], 2048  }
 0x2c9   :  { %1770 = vsyncadd [#allocation4], 4294965248 }
 0x2ca   :  { %1399 = vsyncpa [#allocation3], 1 }
 0x2cb   :  { %1400 = vsyncpa [#allocation4], 1 }

</bundles_post_ra>
